<compile_context>
chip_gen: v7x
topology: tpu7x:2x2x1
jax: 0.10.0
libtpu: 0.0.40
codegen_flags: <defaults>
</compile_context>

<pallas_src>
import functools
import itertools

import numpy as np
import jax
import jax.numpy as jnp
from jax import lax
from jax.experimental import pallas as pl
from jax.experimental.pallas import tpu as pltpu


def _round_up(x, m):
    return (x + m - 1) // m * m


# ----------------------------- Pallas kernel -------------------------------- #
def _double_conv_down_kernel(xr_ref, mk_ref, w1_ref, s1_ref, w2_ref, s2_ref,
                             o_ref, hbuf_ref, *, Do, Ho, Wo, cout, xpad, hpad):
    """Fused conv1(1x3x3, s=(1,2,2)) + BN + ReLU -> conv2(3x3x3) + BN + ReLU.

    xr_ref  : (1, 4, CP, xpad+M) bf16  phase-split input (phase = (h%2)*2 + w%2),
                                       channels zero-padded to CP, lanes zero
                                       left-padded by `xpad`.
    mk_ref  : (32, M)            bf16  per-tap combined 0/1 boundary masks,
                                       row t = (dd+1)*9 + (dh+1)*3 + (dw+1).
    w1_ref  : (9,  cout, CP)     bf16  conv1 weights (BN1 scale folded), t = kh*3+kw.
    s1_ref  : (cout, 1)          f32   BN1 shift.
    w2_ref  : (27, cout, cout)   bf16  conv2 weights (BN2 scale folded), t = kd*9+kh*3+kw.
    s2_ref  : (cout, 1)          f32   BN2 shift.
    o_ref   : (1, cout, M)       f32   output, M = Do*Ho*Wo (lane-dense, NC(DHW)).
    hbuf_ref: (cout, 2*hpad+M)   bf16  zero-bordered VMEM staging buffer for the
                                       intermediate activation, so every conv2 tap
                                       is a static lane-offset window read.
    """
    M = Do * Ho * Wo

    def tap_mask(dd, dh, dw):
        # Pre-combined (1, M) 0/1 mask for a tap offset (dd, dh, dw).
        idx = (dd + 1) * 9 + (dh + 1) * 3 + (dw + 1)
        return mk_ref[idx:idx + 1, :]

    # ---- conv1: kernel (1,3,3), stride (1,2,2), padding (0,1,1) ------------ #
    # With h_in = 2*ho + (kh-1) and the input pre-split into (h%2, w%2) phase
    # planes, every tap is a constant lane shift of one phase plane.
    acc = jnp.zeros((cout, M), jnp.float32)
    for t, (b, c) in enumerate(itertools.product(range(3), range(3))):
        ph, qh = (1, -1) if b == 0 else ((0, 0) if b == 1 else (1, 0))
        pw, qw = (1, -1) if c == 0 else ((0, 0) if c == 1 else (1, 0))
        start = xpad + qh * Wo + qw                     # qh, qw <= 0
        win = xr_ref[0, ph * 2 + pw, :, start:start + M]
        if qh < 0 or qw < 0:
            win = win * tap_mask(0, qh, qw)
        acc = acc + jnp.dot(w1_ref[t], win, preferred_element_type=jnp.float32)
    h = jnp.maximum(acc + s1_ref[...], 0.0)             # folded-BN shift + ReLU

    # Stage the intermediate activation (bf16) in the zero-bordered VMEM buffer.
    # Borders are rewritten every step so the kernel is megacore-partition safe.
    hbuf_ref[:, :hpad] = jnp.zeros((cout, hpad), jnp.bfloat16)
    hbuf_ref[:, hpad + M:] = jnp.zeros((cout, hpad), jnp.bfloat16)
    hbuf_ref[:, hpad:hpad + M] = h.astype(jnp.bfloat16)

    # ---- conv2: kernel (3,3,3), stride 1, padding (1,1,1) ------------------ #
    acc = jnp.zeros((cout, M), jnp.float32)
    for t, (dd, dh, dw) in enumerate(itertools.product((-1, 0, 1), repeat=3)):
        start = hpad + dd * Ho * Wo + dh * Wo + dw
        win = hbuf_ref[:, start:start + M]
        if (dd, dh, dw) != (0, 0, 0):
            win = win * tap_mask(dd, dh, dw)
        acc = acc + jnp.dot(w2_ref[t], win, preferred_element_type=jnp.float32)

    o_ref[0] = jnp.maximum(acc + s2_ref[...], 0.0).astype(o_ref.dtype)


# ------------------------------ JAX wrapper ---------------------------------- #
def fold_bn(gamma, beta, mean, var, eps=1e-5):
    scale = gamma / jnp.sqrt(var + eps)
    shift = beta - mean * scale
    return scale, shift


def _build_mask_table(Do, Ho, Wo):
    """Host-side constant: per-tap combined 0/1 boundary masks, shape (32, M)."""
    M = Do * Ho * Wo
    m = np.arange(M)
    wo = m % Wo
    ho = (m // Wo) % Ho
    do = m // (Ho * Wo)
    tbl = np.zeros((32, M), np.float32)
    for t, (dd, dh, dw) in enumerate(itertools.product((-1, 0, 1), repeat=3)):
        ok = np.ones(M, bool)
        if dd < 0:
            ok &= do >= 1
        elif dd > 0:
            ok &= do < Do - 1
        if dh < 0:
            ok &= ho >= 1
        elif dh > 0:
            ok &= ho < Ho - 1
        if dw < 0:
            ok &= wo >= 1
        elif dw > 0:
            ok &= wo < Wo - 1
        tbl[t] = ok
    return tbl


def double_conv_down(x_ncdhw, params):
    """Forward pass of DoubleConvDown.  Input/output in PyTorch NCDHW layout."""
    N, Cin, D, H, W = x_ncdhw.shape
    w1 = params["w1"]                        # (1, 3, 3, Cin, Cout)  (kd,kh,kw,I,O)
    w2 = params["w2"]                        # (3, 3, 3, Cout, Cout)
    Cout = w1.shape[-1]
    assert H % 2 == 0 and W % 2 == 0
    Do, Ho, Wo = D, H // 2, W // 2
    M = Do * Ho * Wo
    assert M % 128 == 0, "per-batch flattened output must fill whole lanes"
    assert Cout % 8 == 0

    s1, b1 = fold_bn(*params["bn1"])
    s2, b2 = fold_bn(*params["bn2"])

    # Fold BN scales into the conv weights (in f32), reorder to (tap, Cout, Cin),
    # cast to bf16 for the MXU.
    CP = _round_up(max(Cin, 8), 8)                        # padded input channels
    w1t = jnp.transpose(w1[0], (0, 1, 3, 2)) * s1[None, None, :, None]
    w1t = jnp.pad(w1t, ((0, 0), (0, 0), (0, 0), (0, CP - Cin)))
    w1t = w1t.reshape(9, Cout, CP).astype(jnp.bfloat16)
    w2t = jnp.transpose(w2, (0, 1, 2, 4, 3)) * s2[None, None, None, :, None]
    w2t = w2t.reshape(27, Cout, Cout).astype(jnp.bfloat16)
    shift1 = b1.reshape(Cout, 1).astype(jnp.float32)
    shift2 = b2.reshape(Cout, 1).astype(jnp.float32)

    # Host-constant per-tap boundary-mask table (resident in VMEM for all steps).
    masks = jnp.asarray(_build_mask_table(Do, Ho, Wo), dtype=jnp.bfloat16)

    # Phase-split the input over (h%2, w%2) so the stride-2 conv1 becomes constant
    # lane shifts inside the kernel; pad channels to CP, left-pad lanes with zeros.
    XPAD = _round_up(Wo + 1, 128)
    xp = jnp.pad(x_ncdhw, ((0, 0), (0, CP - Cin), (0, 0), (0, 0), (0, 0)))
    xp = xp.reshape(N, CP, D, Ho, 2, Wo, 2)               # h = 2*hy+ph, w = 2*wx+pw
    xp = jnp.transpose(xp, (0, 4, 6, 1, 2, 3, 5))         # (N, ph, pw, CP, D, Ho, Wo)
    xp = xp.reshape(N, 4, CP, M).astype(jnp.bfloat16)
    xr = jnp.pad(xp, ((0, 0), (0, 0), (0, 0), (XPAD, 0)))

    HPAD = _round_up(Ho * Wo + Wo + 1, 128)
    kernel = functools.partial(_double_conv_down_kernel, Do=Do, Ho=Ho, Wo=Wo,
                               cout=Cout, xpad=XPAD, hpad=HPAD)

    out = pl.pallas_call(
        kernel,
        out_shape=jax.ShapeDtypeStruct((N, Cout, M), jnp.float32),
        grid_spec=pltpu.PrefetchScalarGridSpec(
            num_scalar_prefetch=0,
            grid=(N,),
            in_specs=[
                pl.BlockSpec((1, 4, CP, XPAD + M), lambda n: (n, 0, 0, 0)),
                pl.BlockSpec((32, M), lambda n: (0, 0)),
                pl.BlockSpec((9, Cout, CP), lambda n: (0, 0, 0)),
                pl.BlockSpec((Cout, 1), lambda n: (0, 0)),
                pl.BlockSpec((27, Cout, Cout), lambda n: (0, 0, 0)),
                pl.BlockSpec((Cout, 1), lambda n: (0, 0)),
            ],
            out_specs=pl.BlockSpec((1, Cout, M), lambda n: (n, 0, 0)),
            scratch_shapes=[pltpu.VMEM((Cout, 2 * HPAD + M), jnp.bfloat16)],
        ),
        compiler_params=pltpu.CompilerParams(
            dimension_semantics=("parallel",)),
    )(xr, masks, w1t, shift1, w2t, shift2)

    return out.reshape(N, Cout, Do, Ho, Wo)               # already NCDHW


# -------------------------- pure-JAX reference ------------------------------ #
def _ref_forward(x_ncdhw, params):
    def conv(x, w, stride, padding):
        return lax.conv_general_dilated(
            x, w, window_strides=stride,
            padding=[(p, p) for p in padding],
            dimension_numbers=("NDHWC", "DHWIO", "NDHWC"),
            precision=lax.Precision.HIGHEST)

    x = jnp.transpose(x_ncdhw, (0, 2, 3, 4, 1))
    s1, b1 = fold_bn(*params["bn1"])
    s2, b2 = fold_bn(*params["bn2"])
    y = jnp.maximum(conv(x, params["w1"], (1, 2, 2), (0, 1, 1)) * s1 + b1, 0.0)
    y = jnp.maximum(conv(y, params["w2"], (1, 1, 1), (1, 1, 1)) * s2 + b2, 0.0)
    return jnp.transpose(y, (0, 4, 1, 2, 3))


# --------------------------------- main -------------------------------------- #
if __name__ == "__main__":
    N, in_ch, out_ch, D, H, W = 2, 4, 8, 4, 16, 16
    key = jax.random.PRNGKey(0)
    k = jax.random.split(key, 9)

    # Deterministic parameters (weights stored as (kd, kh, kw, Cin, Cout)).
    params = {
        "w1": jax.random.normal(k[0], (1, 3, 3, in_ch, out_ch), jnp.float32)
              * (1.0 / np.sqrt(in_ch * 9)),
        "w2": jax.random.normal(k[1], (3, 3, 3, out_ch, out_ch), jnp.float32)
              * (1.0 / np.sqrt(out_ch * 27)),
        "bn1": (1.0 + 0.1 * jax.random.normal(k[2], (out_ch,), jnp.float32),      # gamma
                0.1 * jax.random.normal(k[3], (out_ch,), jnp.float32),            # beta
                0.1 * jax.random.normal(k[4], (out_ch,), jnp.float32),            # running_mean
                0.5 + jnp.abs(jax.random.normal(k[5], (out_ch,), jnp.float32))),  # running_var
        "bn2": (1.0 + 0.1 * jax.random.normal(k[6], (out_ch,), jnp.float32),
                0.1 * jax.random.normal(k[7], (out_ch,), jnp.float32),
                jnp.zeros((out_ch,), jnp.float32),
                jnp.ones((out_ch,), jnp.float32)),
    }

    x = jax.random.normal(k[8], (N, in_ch, D, H, W), jnp.float32)

    out = jax.block_until_ready(jax.jit(double_conv_down)(x, params))
    assert out.shape == (N, out_ch, D, H // 2, W // 2), out.shape

    ref = jax.block_until_ready(_ref_forward(x, params))
    # Kernel uses bf16 MXU operands (f32 accumulation); reference is all-f32.
    np.testing.assert_allclose(np.asarray(out), np.asarray(ref),
                               rtol=2e-2, atol=2e-2)

    print("KERNEL_OK")
</pallas_src>

<mosaic_0001>
module attributes {stable_mosaic.version = 11 : i64} {
  func.func @_double_conv_down_kernel(%arg0: i32, %arg1: memref<1x4x8x384xbf16, #tpu.memory_space<vmem>>, %arg2: memref<32x256xbf16, #tpu.memory_space<vmem>>, %arg3: memref<9x8x8xbf16, #tpu.memory_space<vmem>>, %arg4: memref<8x1xf32, #tpu.memory_space<vmem>>, %arg5: memref<27x8x8xbf16, #tpu.memory_space<vmem>>, %arg6: memref<8x1xf32, #tpu.memory_space<vmem>>, %arg7: memref<1x8x256xf32, #tpu.memory_space<vmem>>, %arg8: memref<8x512xbf16, #tpu.memory_space<vmem>>) attributes {dimension_semantics = [#tpu.dimension_semantics<parallel>], iteration_bounds = array<i64: 2>, scalar_prefetch = 0 : i64, scratch_operands = 1 : i64, tpu.core_type = #tpu.core_type<tc>, window_params = [{transform_indices = @transform_0, window_bounds = array<i64: 1, 4, 8, 384>}, {pipeline_mode = #tpu.pipeline_mode<synchronous>, transform_indices = @transform_1, window_bounds = array<i64: 32, 256>}, {pipeline_mode = #tpu.pipeline_mode<synchronous>, transform_indices = @transform_2, window_bounds = array<i64: 9, 8, 8>}, {pipeline_mode = #tpu.pipeline_mode<synchronous>, transform_indices = @transform_3, window_bounds = array<i64: 8, 1>}, {pipeline_mode = #tpu.pipeline_mode<synchronous>, transform_indices = @transform_4, window_bounds = array<i64: 27, 8, 8>}, {pipeline_mode = #tpu.pipeline_mode<synchronous>, transform_indices = @transform_5, window_bounds = array<i64: 8, 1>}, {transform_indices = @transform_6, window_bounds = array<i64: 1, 8, 256>}]} {
    %cst = arith.constant 0.000000e+00 : f32
    %0 = vector.broadcast %cst : f32 to vector<8x256xf32>
    %c0 = arith.constant 0 : index
    %c3 = arith.constant 3 : index
    %c0_0 = arith.constant 0 : index
    %c119 = arith.constant 119 : index
    %1 = vector.load %arg1[%c0, %c3, %c0_0, %c119] : memref<1x4x8x384xbf16, #tpu.memory_space<vmem>>, vector<1x1x8x256xbf16>
    %2 = vector.shape_cast %1 : vector<1x1x8x256xbf16> to vector<8x256xbf16>
    %c9 = arith.constant 9 : index
    %c0_1 = arith.constant 0 : index
    %3 = vector.load %arg2[%c9, %c0_1] : memref<32x256xbf16, #tpu.memory_space<vmem>>, vector<1x256xbf16>
    %4 = vector.broadcast %3 : vector<1x256xbf16> to vector<8x256xbf16>
    %5 = arith.mulf %2, %4 : vector<8x256xbf16>
    %c0_2 = arith.constant 0 : index
    %c0_3 = arith.constant 0 : index
    %c0_4 = arith.constant 0 : index
    %6 = vector.load %arg3[%c0_2, %c0_3, %c0_4] : memref<9x8x8xbf16, #tpu.memory_space<vmem>>, vector<1x8x8xbf16>
    %7 = vector.shape_cast %6 : vector<1x8x8xbf16> to vector<8x8xbf16>
    %cst_5 = arith.constant dense<0.000000e+00> : vector<8x256xf32>
    %8 = tpu.matmul %7, %5, %cst_5 {dimension_numbers = #tpu.dot_dimension_numbers<[1], [0], [0], [1], [0, 0, 1, 1], [], []>} : vector<8x8xbf16>, vector<8x256xbf16>, vector<8x256xf32> -> vector<8x256xf32>
    %9 = arith.addf %0, %8 : vector<8x256xf32>
    %c0_6 = arith.constant 0 : index
    %c2 = arith.constant 2 : index
    %c0_7 = arith.constant 0 : index
    %c120 = arith.constant 120 : index
    %10 = vector.load %arg1[%c0_6, %c2, %c0_7, %c120] : memref<1x4x8x384xbf16, #tpu.memory_space<vmem>>, vector<1x1x8x256xbf16>
    %11 = vector.shape_cast %10 : vector<1x1x8x256xbf16> to vector<8x256xbf16>
    %c10 = arith.constant 10 : index
    %c0_8 = arith.constant 0 : index
    %12 = vector.load %arg2[%c10, %c0_8] : memref<32x256xbf16, #tpu.memory_space<vmem>>, vector<1x256xbf16>
    %13 = vector.broadcast %12 : vector<1x256xbf16> to vector<8x256xbf16>
    %14 = arith.mulf %11, %13 : vector<8x256xbf16>
    %c1 = arith.constant 1 : index
    %c0_9 = arith.constant 0 : index
    %c0_10 = arith.constant 0 : index
    %15 = vector.load %arg3[%c1, %c0_9, %c0_10] : memref<9x8x8xbf16, #tpu.memory_space<vmem>>, vector<1x8x8xbf16>
    %16 = vector.shape_cast %15 : vector<1x8x8xbf16> to vector<8x8xbf16>
    %cst_11 = arith.constant dense<0.000000e+00> : vector<8x256xf32>
    %17 = tpu.matmul %16, %14, %cst_11 {dimension_numbers = #tpu.dot_dimension_numbers<[1], [0], [0], [1], [0, 0, 1, 1], [], []>} : vector<8x8xbf16>, vector<8x256xbf16>, vector<8x256xf32> -> vector<8x256xf32>
    %18 = arith.addf %9, %17 : vector<8x256xf32>
    %c0_12 = arith.constant 0 : index
    %c3_13 = arith.constant 3 : index
    %c0_14 = arith.constant 0 : index
    %c120_15 = arith.constant 120 : index
    %19 = vector.load %arg1[%c0_12, %c3_13, %c0_14, %c120_15] : memref<1x4x8x384xbf16, #tpu.memory_space<vmem>>, vector<1x1x8x256xbf16>
    %20 = vector.shape_cast %19 : vector<1x1x8x256xbf16> to vector<8x256xbf16>
    %c10_16 = arith.constant 10 : index
    %c0_17 = arith.constant 0 : index
    %21 = vector.load %arg2[%c10_16, %c0_17] : memref<32x256xbf16, #tpu.memory_space<vmem>>, vector<1x256xbf16>
    %22 = vector.broadcast %21 : vector<1x256xbf16> to vector<8x256xbf16>
    %23 = arith.mulf %20, %22 : vector<8x256xbf16>
    %c2_18 = arith.constant 2 : index
    %c0_19 = arith.constant 0 : index
    %c0_20 = arith.constant 0 : index
    %24 = vector.load %arg3[%c2_18, %c0_19, %c0_20] : memref<9x8x8xbf16, #tpu.memory_space<vmem>>, vector<1x8x8xbf16>
    %25 = vector.shape_cast %24 : vector<1x8x8xbf16> to vector<8x8xbf16>
    %cst_21 = arith.constant dense<0.000000e+00> : vector<8x256xf32>
    %26 = tpu.matmul %25, %23, %cst_21 {dimension_numbers = #tpu.dot_dimension_numbers<[1], [0], [0], [1], [0, 0, 1, 1], [], []>} : vector<8x8xbf16>, vector<8x256xbf16>, vector<8x256xf32> -> vector<8x256xf32>
    %27 = arith.addf %18, %26 : vector<8x256xf32>
    %c0_22 = arith.constant 0 : index
    %c1_23 = arith.constant 1 : index
    %c0_24 = arith.constant 0 : index
    %c127 = arith.constant 127 : index
    %28 = vector.load %arg1[%c0_22, %c1_23, %c0_24, %c127] : memref<1x4x8x384xbf16, #tpu.memory_space<vmem>>, vector<1x1x8x256xbf16>
    %29 = vector.shape_cast %28 : vector<1x1x8x256xbf16> to vector<8x256xbf16>
    %c12 = arith.constant 12 : index
    %c0_25 = arith.constant 0 : index
    %30 = vector.load %arg2[%c12, %c0_25] : memref<32x256xbf16, #tpu.memory_space<vmem>>, vector<1x256xbf16>
    %31 = vector.broadcast %30 : vector<1x256xbf16> to vector<8x256xbf16>
    %32 = arith.mulf %29, %31 : vector<8x256xbf16>
    %c3_26 = arith.constant 3 : index
    %c0_27 = arith.constant 0 : index
    %c0_28 = arith.constant 0 : index
    %33 = vector.load %arg3[%c3_26, %c0_27, %c0_28] : memref<9x8x8xbf16, #tpu.memory_space<vmem>>, vector<1x8x8xbf16>
    %34 = vector.shape_cast %33 : vector<1x8x8xbf16> to vector<8x8xbf16>
    %cst_29 = arith.constant dense<0.000000e+00> : vector<8x256xf32>
    %35 = tpu.matmul %34, %32, %cst_29 {dimension_numbers = #tpu.dot_dimension_numbers<[1], [0], [0], [1], [0, 0, 1, 1], [], []>} : vector<8x8xbf16>, vector<8x256xbf16>, vector<8x256xf32> -> vector<8x256xf32>
    %36 = arith.addf %27, %35 : vector<8x256xf32>
    %c0_30 = arith.constant 0 : index
    %c0_31 = arith.constant 0 : index
    %c0_32 = arith.constant 0 : index
    %c128 = arith.constant 128 : index
    %37 = vector.load %arg1[%c0_30, %c0_31, %c0_32, %c128] : memref<1x4x8x384xbf16, #tpu.memory_space<vmem>>, vector<1x1x8x256xbf16>
    %38 = vector.shape_cast %37 : vector<1x1x8x256xbf16> to vector<8x256xbf16>
    %c4 = arith.constant 4 : index
    %c0_33 = arith.constant 0 : index
    %c0_34 = arith.constant 0 : index
    %39 = vector.load %arg3[%c4, %c0_33, %c0_34] : memref<9x8x8xbf16, #tpu.memory_space<vmem>>, vector<1x8x8xbf16>
    %40 = vector.shape_cast %39 : vector<1x8x8xbf16> to vector<8x8xbf16>
    %cst_35 = arith.constant dense<0.000000e+00> : vector<8x256xf32>
    %41 = tpu.matmul %40, %38, %cst_35 {dimension_numbers = #tpu.dot_dimension_numbers<[1], [0], [0], [1], [0, 0, 1, 1], [], []>} : vector<8x8xbf16>, vector<8x256xbf16>, vector<8x256xf32> -> vector<8x256xf32>
    %42 = arith.addf %36, %41 : vector<8x256xf32>
    %c0_36 = arith.constant 0 : index
    %c1_37 = arith.constant 1 : index
    %c0_38 = arith.constant 0 : index
    %c128_39 = arith.constant 128 : index
    %43 = vector.load %arg1[%c0_36, %c1_37, %c0_38, %c128_39] : memref<1x4x8x384xbf16, #tpu.memory_space<vmem>>, vector<1x1x8x256xbf16>
    %44 = vector.shape_cast %43 : vector<1x1x8x256xbf16> to vector<8x256xbf16>
    %c5 = arith.constant 5 : index
    %c0_40 = arith.constant 0 : index
    %c0_41 = arith.constant 0 : index
    %45 = vector.load %arg3[%c5, %c0_40, %c0_41] : memref<9x8x8xbf16, #tpu.memory_space<vmem>>, vector<1x8x8xbf16>
    %46 = vector.shape_cast %45 : vector<1x8x8xbf16> to vector<8x8xbf16>
    %cst_42 = arith.constant dense<0.000000e+00> : vector<8x256xf32>
    %47 = tpu.matmul %46, %44, %cst_42 {dimension_numbers = #tpu.dot_dimension_numbers<[1], [0], [0], [1], [0, 0, 1, 1], [], []>} : vector<8x8xbf16>, vector<8x256xbf16>, vector<8x256xf32> -> vector<8x256xf32>
    %48 = arith.addf %42, %47 : vector<8x256xf32>
    %c0_43 = arith.constant 0 : index
    %c3_44 = arith.constant 3 : index
    %c0_45 = arith.constant 0 : index
    %c127_46 = arith.constant 127 : index
    %49 = vector.load %arg1[%c0_43, %c3_44, %c0_45, %c127_46] : memref<1x4x8x384xbf16, #tpu.memory_space<vmem>>, vector<1x1x8x256xbf16>
    %50 = vector.shape_cast %49 : vector<1x1x8x256xbf16> to vector<8x256xbf16>
    %c12_47 = arith.constant 12 : index
    %c0_48 = arith.constant 0 : index
    %51 = vector.load %arg2[%c12_47, %c0_48] : memref<32x256xbf16, #tpu.memory_space<vmem>>, vector<1x256xbf16>
    %52 = vector.broadcast %51 : vector<1x256xbf16> to vector<8x256xbf16>
    %53 = arith.mulf %50, %52 : vector<8x256xbf16>
    %c6 = arith.constant 6 : index
    %c0_49 = arith.constant 0 : index
    %c0_50 = arith.constant 0 : index
    %54 = vector.load %arg3[%c6, %c0_49, %c0_50] : memref<9x8x8xbf16, #tpu.memory_space<vmem>>, vector<1x8x8xbf16>
    %55 = vector.shape_cast %54 : vector<1x8x8xbf16> to vector<8x8xbf16>
    %cst_51 = arith.constant dense<0.000000e+00> : vector<8x256xf32>
    %56 = tpu.matmul %55, %53, %cst_51 {dimension_numbers = #tpu.dot_dimension_numbers<[1], [0], [0], [1], [0, 0, 1, 1], [], []>} : vector<8x8xbf16>, vector<8x256xbf16>, vector<8x256xf32> -> vector<8x256xf32>
    %57 = arith.addf %48, %56 : vector<8x256xf32>
    %c0_52 = arith.constant 0 : index
    %c2_53 = arith.constant 2 : index
    %c0_54 = arith.constant 0 : index
    %c128_55 = arith.constant 128 : index
    %58 = vector.load %arg1[%c0_52, %c2_53, %c0_54, %c128_55] : memref<1x4x8x384xbf16, #tpu.memory_space<vmem>>, vector<1x1x8x256xbf16>
    %59 = vector.shape_cast %58 : vector<1x1x8x256xbf16> to vector<8x256xbf16>
    %c7 = arith.constant 7 : index
    %c0_56 = arith.constant 0 : index
    %c0_57 = arith.constant 0 : index
    %60 = vector.load %arg3[%c7, %c0_56, %c0_57] : memref<9x8x8xbf16, #tpu.memory_space<vmem>>, vector<1x8x8xbf16>
    %61 = vector.shape_cast %60 : vector<1x8x8xbf16> to vector<8x8xbf16>
    %cst_58 = arith.constant dense<0.000000e+00> : vector<8x256xf32>
    %62 = tpu.matmul %61, %59, %cst_58 {dimension_numbers = #tpu.dot_dimension_numbers<[1], [0], [0], [1], [0, 0, 1, 1], [], []>} : vector<8x8xbf16>, vector<8x256xbf16>, vector<8x256xf32> -> vector<8x256xf32>
    %63 = arith.addf %57, %62 : vector<8x256xf32>
    %c0_59 = arith.constant 0 : index
    %c3_60 = arith.constant 3 : index
    %c0_61 = arith.constant 0 : index
    %c128_62 = arith.constant 128 : index
    %64 = vector.load %arg1[%c0_59, %c3_60, %c0_61, %c128_62] : memref<1x4x8x384xbf16, #tpu.memory_space<vmem>>, vector<1x1x8x256xbf16>
    %65 = vector.shape_cast %64 : vector<1x1x8x256xbf16> to vector<8x256xbf16>
    %c8 = arith.constant 8 : index
    %c0_63 = arith.constant 0 : index
    %c0_64 = arith.constant 0 : index
    %66 = vector.load %arg3[%c8, %c0_63, %c0_64] : memref<9x8x8xbf16, #tpu.memory_space<vmem>>, vector<1x8x8xbf16>
    %67 = vector.shape_cast %66 : vector<1x8x8xbf16> to vector<8x8xbf16>
    %cst_65 = arith.constant dense<0.000000e+00> : vector<8x256xf32>
    %68 = tpu.matmul %67, %65, %cst_65 {dimension_numbers = #tpu.dot_dimension_numbers<[1], [0], [0], [1], [0, 0, 1, 1], [], []>} : vector<8x8xbf16>, vector<8x256xbf16>, vector<8x256xf32> -> vector<8x256xf32>
    %69 = arith.addf %63, %68 : vector<8x256xf32>
    %c0_66 = arith.constant 0 : index
    %c0_67 = arith.constant 0 : index
    %70 = vector.load %arg4[%c0_66, %c0_67] : memref<8x1xf32, #tpu.memory_space<vmem>>, vector<8x1xf32>
    %71 = vector.broadcast %70 : vector<8x1xf32> to vector<8x256xf32>
    %72 = arith.addf %69, %71 : vector<8x256xf32>
    %cst_68 = arith.constant 0.000000e+00 : f32
    %73 = vector.broadcast %cst_68 : f32 to vector<8x256xf32>
    %74 = arith.maximumf %72, %73 : vector<8x256xf32>
    %cst_69 = arith.constant 0.000000e+00 : bf16
    %75 = vector.broadcast %cst_69 : bf16 to vector<8x128xbf16>
    %c0_70 = arith.constant 0 : index
    %c0_71 = arith.constant 0 : index
    %76 = vector.load %arg8[%c0_70, %c0_71] : memref<8x512xbf16, #tpu.memory_space<vmem>>, vector<8x128xbf16>
    tpu.vector_store %arg8[%c0_70, %c0_71], %75 {strides = array<i32>} : memref<8x512xbf16, #tpu.memory_space<vmem>>, vector<8x128xbf16>,
    %cst_72 = arith.constant 0.000000e+00 : bf16
    %77 = vector.broadcast %cst_72 : bf16 to vector<8x128xbf16>
    %c0_73 = arith.constant 0 : index
    %c384 = arith.constant 384 : index
    %78 = vector.load %arg8[%c0_73, %c384] : memref<8x512xbf16, #tpu.memory_space<vmem>>, vector<8x128xbf16>
    tpu.vector_store %arg8[%c0_73, %c384], %77 {strides = array<i32>} : memref<8x512xbf16, #tpu.memory_space<vmem>>, vector<8x128xbf16>,
    %79 = arith.truncf %74 : vector<8x256xf32> to vector<8x256xbf16>
    %c0_74 = arith.constant 0 : index
    %c128_75 = arith.constant 128 : index
    %80 = vector.load %arg8[%c0_74, %c128_75] : memref<8x512xbf16, #tpu.memory_space<vmem>>, vector<8x256xbf16>
    tpu.vector_store %arg8[%c0_74, %c128_75], %79 {strides = array<i32>} : memref<8x512xbf16, #tpu.memory_space<vmem>>, vector<8x256xbf16>,
    %cst_76 = arith.constant 0.000000e+00 : f32
    %81 = vector.broadcast %cst_76 : f32 to vector<8x256xf32>
    %c0_77 = arith.constant 0 : index
    %c55 = arith.constant 55 : index
    %82 = vector.load %arg8[%c0_77, %c55] : memref<8x512xbf16, #tpu.memory_space<vmem>>, vector<8x256xbf16>
    %c0_78 = arith.constant 0 : index
    %c0_79 = arith.constant 0 : index
    %83 = vector.load %arg2[%c0_78, %c0_79] : memref<32x256xbf16, #tpu.memory_space<vmem>>, vector<1x256xbf16>
    %84 = vector.broadcast %83 : vector<1x256xbf16> to vector<8x256xbf16>
    %85 = arith.mulf %82, %84 : vector<8x256xbf16>
    %c0_80 = arith.constant 0 : index
    %c0_81 = arith.constant 0 : index
    %c0_82 = arith.constant 0 : index
    %86 = vector.load %arg5[%c0_80, %c0_81, %c0_82] : memref<27x8x8xbf16, #tpu.memory_space<vmem>>, vector<1x8x8xbf16>
    %87 = vector.shape_cast %86 : vector<1x8x8xbf16> to vector<8x8xbf16>
    %cst_83 = arith.constant dense<0.000000e+00> : vector<8x256xf32>
    %88 = tpu.matmul %87, %85, %cst_83 {dimension_numbers = #tpu.dot_dimension_numbers<[1], [0], [0], [1], [0, 0, 1, 1], [], []>} : vector<8x8xbf16>, vector<8x256xbf16>, vector<8x256xf32> -> vector<8x256xf32>
    %89 = arith.addf %81, %88 : vector<8x256xf32>
    %c0_84 = arith.constant 0 : index
    %c56 = arith.constant 56 : index
    %90 = vector.load %arg8[%c0_84, %c56] : memref<8x512xbf16, #tpu.memory_space<vmem>>, vector<8x256xbf16>
    %c1_85 = arith.constant 1 : index
    %c0_86 = arith.constant 0 : index
    %91 = vector.load %arg2[%c1_85, %c0_86] : memref<32x256xbf16, #tpu.memory_space<vmem>>, vector<1x256xbf16>
    %92 = vector.broadcast %91 : vector<1x256xbf16> to vector<8x256xbf16>
    %93 = arith.mulf %90, %92 : vector<8x256xbf16>
    %c1_87 = arith.constant 1 : index
    %c0_88 = arith.constant 0 : index
    %c0_89 = arith.constant 0 : index
    %94 = vector.load %arg5[%c1_87, %c0_88, %c0_89] : memref<27x8x8xbf16, #tpu.memory_space<vmem>>, vector<1x8x8xbf16>
    %95 = vector.shape_cast %94 : vector<1x8x8xbf16> to vector<8x8xbf16>
    %cst_90 = arith.constant dense<0.000000e+00> : vector<8x256xf32>
    %96 = tpu.matmul %95, %93, %cst_90 {dimension_numbers = #tpu.dot_dimension_numbers<[1], [0], [0], [1], [0, 0, 1, 1], [], []>} : vector<8x8xbf16>, vector<8x256xbf16>, vector<8x256xf32> -> vector<8x256xf32>
    %97 = arith.addf %89, %96 : vector<8x256xf32>
    %c0_91 = arith.constant 0 : index
    %c57 = arith.constant 57 : index
    %98 = vector.load %arg8[%c0_91, %c57] : memref<8x512xbf16, #tpu.memory_space<vmem>>, vector<8x256xbf16>
    %c2_92 = arith.constant 2 : index
    %c0_93 = arith.constant 0 : index
    %99 = vector.load %arg2[%c2_92, %c0_93] : memref<32x256xbf16, #tpu.memory_space<vmem>>, vector<1x256xbf16>
    %100 = vector.broadcast %99 : vector<1x256xbf16> to vector<8x256xbf16>
    %101 = arith.mulf %98, %100 : vector<8x256xbf16>
    %c2_94 = arith.constant 2 : index
    %c0_95 = arith.constant 0 : index
    %c0_96 = arith.constant 0 : index
    %102 = vector.load %arg5[%c2_94, %c0_95, %c0_96] : memref<27x8x8xbf16, #tpu.memory_space<vmem>>, vector<1x8x8xbf16>
    %103 = vector.shape_cast %102 : vector<1x8x8xbf16> to vector<8x8xbf16>
    %cst_97 = arith.constant dense<0.000000e+00> : vector<8x256xf32>
    %104 = tpu.matmul %103, %101, %cst_97 {dimension_numbers = #tpu.dot_dimension_numbers<[1], [0], [0], [1], [0, 0, 1, 1], [], []>} : vector<8x8xbf16>, vector<8x256xbf16>, vector<8x256xf32> -> vector<8x256xf32>
    %105 = arith.addf %97, %104 : vector<8x256xf32>
    %c0_98 = arith.constant 0 : index
    %c63 = arith.constant 63 : index
    %106 = vector.load %arg8[%c0_98, %c63] : memref<8x512xbf16, #tpu.memory_space<vmem>>, vector<8x256xbf16>
    %c3_99 = arith.constant 3 : index
    %c0_100 = arith.constant 0 : index
    %107 = vector.load %arg2[%c3_99, %c0_100] : memref<32x256xbf16, #tpu.memory_space<vmem>>, vector<1x256xbf16>
    %108 = vector.broadcast %107 : vector<1x256xbf16> to vector<8x256xbf16>
    %109 = arith.mulf %106, %108 : vector<8x256xbf16>
    %c3_101 = arith.constant 3 : index
    %c0_102 = arith.constant 0 : index
    %c0_103 = arith.constant 0 : index
    %110 = vector.load %arg5[%c3_101, %c0_102, %c0_103] : memref<27x8x8xbf16, #tpu.memory_space<vmem>>, vector<1x8x8xbf16>
    %111 = vector.shape_cast %110 : vector<1x8x8xbf16> to vector<8x8xbf16>
    %cst_104 = arith.constant dense<0.000000e+00> : vector<8x256xf32>
    %112 = tpu.matmul %111, %109, %cst_104 {dimension_numbers = #tpu.dot_dimension_numbers<[1], [0], [0], [1], [0, 0, 1, 1], [], []>} : vector<8x8xbf16>, vector<8x256xbf16>, vector<8x256xf32> -> vector<8x256xf32>
    %113 = arith.addf %105, %112 : vector<8x256xf32>
    %c0_105 = arith.constant 0 : index
    %c64 = arith.constant 64 : index
    %114 = vector.load %arg8[%c0_105, %c64] : memref<8x512xbf16, #tpu.memory_space<vmem>>, vector<8x256xbf16>
    %c4_106 = arith.constant 4 : index
    %c0_107 = arith.constant 0 : index
    %115 = vector.load %arg2[%c4_106, %c0_107] : memref<32x256xbf16, #tpu.memory_space<vmem>>, vector<1x256xbf16>
    %116 = vector.broadcast %115 : vector<1x256xbf16> to vector<8x256xbf16>
    %117 = arith.mulf %114, %116 : vector<8x256xbf16>
    %c4_108 = arith.constant 4 : index
    %c0_109 = arith.constant 0 : index
    %c0_110 = arith.constant 0 : index
    %118 = vector.load %arg5[%c4_108, %c0_109, %c0_110] : memref<27x8x8xbf16, #tpu.memory_space<vmem>>, vector<1x8x8xbf16>
    %119 = vector.shape_cast %118 : vector<1x8x8xbf16> to vector<8x8xbf16>
    %cst_111 = arith.constant dense<0.000000e+00> : vector<8x256xf32>
    %120 = tpu.matmul %119, %117, %cst_111 {dimension_numbers = #tpu.dot_dimension_numbers<[1], [0], [0], [1], [0, 0, 1, 1], [], []>} : vector<8x8xbf16>, vector<8x256xbf16>, vector<8x256xf32> -> vector<8x256xf32>
    %121 = arith.addf %113, %120 : vector<8x256xf32>
    %c0_112 = arith.constant 0 : index
    %c65 = arith.constant 65 : index
    %122 = vector.load %arg8[%c0_112, %c65] : memref<8x512xbf16, #tpu.memory_space<vmem>>, vector<8x256xbf16>
    %c5_113 = arith.constant 5 : index
    %c0_114 = arith.constant 0 : index
    %123 = vector.load %arg2[%c5_113, %c0_114] : memref<32x256xbf16, #tpu.memory_space<vmem>>, vector<1x256xbf16>
    %124 = vector.broadcast %123 : vector<1x256xbf16> to vector<8x256xbf16>
    %125 = arith.mulf %122, %124 : vector<8x256xbf16>
    %c5_115 = arith.constant 5 : index
    %c0_116 = arith.constant 0 : index
    %c0_117 = arith.constant 0 : index
    %126 = vector.load %arg5[%c5_115, %c0_116, %c0_117] : memref<27x8x8xbf16, #tpu.memory_space<vmem>>, vector<1x8x8xbf16>
    %127 = vector.shape_cast %126 : vector<1x8x8xbf16> to vector<8x8xbf16>
    %cst_118 = arith.constant dense<0.000000e+00> : vector<8x256xf32>
    %128 = tpu.matmul %127, %125, %cst_118 {dimension_numbers = #tpu.dot_dimension_numbers<[1], [0], [0], [1], [0, 0, 1, 1], [], []>} : vector<8x8xbf16>, vector<8x256xbf16>, vector<8x256xf32> -> vector<8x256xf32>
    %129 = arith.addf %121, %128 : vector<8x256xf32>
    %c0_119 = arith.constant 0 : index
    %c71 = arith.constant 71 : index
    %130 = vector.load %arg8[%c0_119, %c71] : memref<8x512xbf16, #tpu.memory_space<vmem>>, vector<8x256xbf16>
    %c6_120 = arith.constant 6 : index
    %c0_121 = arith.constant 0 : index
    %131 = vector.load %arg2[%c6_120, %c0_121] : memref<32x256xbf16, #tpu.memory_space<vmem>>, vector<1x256xbf16>
    %132 = vector.broadcast %131 : vector<1x256xbf16> to vector<8x256xbf16>
    %133 = arith.mulf %130, %132 : vector<8x256xbf16>
    %c6_122 = arith.constant 6 : index
    %c0_123 = arith.constant 0 : index
    %c0_124 = arith.constant 0 : index
    %134 = vector.load %arg5[%c6_122, %c0_123, %c0_124] : memref<27x8x8xbf16, #tpu.memory_space<vmem>>, vector<1x8x8xbf16>
    %135 = vector.shape_cast %134 : vector<1x8x8xbf16> to vector<8x8xbf16>
    %cst_125 = arith.constant dense<0.000000e+00> : vector<8x256xf32>
    %136 = tpu.matmul %135, %133, %cst_125 {dimension_numbers = #tpu.dot_dimension_numbers<[1], [0], [0], [1], [0, 0, 1, 1], [], []>} : vector<8x8xbf16>, vector<8x256xbf16>, vector<8x256xf32> -> vector<8x256xf32>
    %137 = arith.addf %129, %136 : vector<8x256xf32>
    %c0_126 = arith.constant 0 : index
    %c72 = arith.constant 72 : index
    %138 = vector.load %arg8[%c0_126, %c72] : memref<8x512xbf16, #tpu.memory_space<vmem>>, vector<8x256xbf16>
    %c7_127 = arith.constant 7 : index
    %c0_128 = arith.constant 0 : index
    %139 = vector.load %arg2[%c7_127, %c0_128] : memref<32x256xbf16, #tpu.memory_space<vmem>>, vector<1x256xbf16>
    %140 = vector.broadcast %139 : vector<1x256xbf16> to vector<8x256xbf16>
    %141 = arith.mulf %138, %140 : vector<8x256xbf16>
    %c7_129 = arith.constant 7 : index
    %c0_130 = arith.constant 0 : index
    %c0_131 = arith.constant 0 : index
    %142 = vector.load %arg5[%c7_129, %c0_130, %c0_131] : memref<27x8x8xbf16, #tpu.memory_space<vmem>>, vector<1x8x8xbf16>
    %143 = vector.shape_cast %142 : vector<1x8x8xbf16> to vector<8x8xbf16>
    %cst_132 = arith.constant dense<0.000000e+00> : vector<8x256xf32>
    %144 = tpu.matmul %143, %141, %cst_132 {dimension_numbers = #tpu.dot_dimension_numbers<[1], [0], [0], [1], [0, 0, 1, 1], [], []>} : vector<8x8xbf16>, vector<8x256xbf16>, vector<8x256xf32> -> vector<8x256xf32>
    %145 = arith.addf %137, %144 : vector<8x256xf32>
    %c0_133 = arith.constant 0 : index
    %c73 = arith.constant 73 : index
    %146 = vector.load %arg8[%c0_133, %c73] : memref<8x512xbf16, #tpu.memory_space<vmem>>, vector<8x256xbf16>
    %c8_134 = arith.constant 8 : index
    %c0_135 = arith.constant 0 : index
    %147 = vector.load %arg2[%c8_134, %c0_135] : memref<32x256xbf16, #tpu.memory_space<vmem>>, vector<1x256xbf16>
    %148 = vector.broadcast %147 : vector<1x256xbf16> to vector<8x256xbf16>
    %149 = arith.mulf %146, %148 : vector<8x256xbf16>
    %c8_136 = arith.constant 8 : index
    %c0_137 = arith.constant 0 : index
    %c0_138 = arith.constant 0 : index
    %150 = vector.load %arg5[%c8_136, %c0_137, %c0_138] : memref<27x8x8xbf16, #tpu.memory_space<vmem>>, vector<1x8x8xbf16>
    %151 = vector.shape_cast %150 : vector<1x8x8xbf16> to vector<8x8xbf16>
    %cst_139 = arith.constant dense<0.000000e+00> : vector<8x256xf32>
    %152 = tpu.matmul %151, %149, %cst_139 {dimension_numbers = #tpu.dot_dimension_numbers<[1], [0], [0], [1], [0, 0, 1, 1], [], []>} : vector<8x8xbf16>, vector<8x256xbf16>, vector<8x256xf32> -> vector<8x256xf32>
    %153 = arith.addf %145, %152 : vector<8x256xf32>
    %c0_140 = arith.constant 0 : index
    %c119_141 = arith.constant 119 : index
    %154 = vector.load %arg8[%c0_140, %c119_141] : memref<8x512xbf16, #tpu.memory_space<vmem>>, vector<8x256xbf16>
    %c9_142 = arith.constant 9 : index
    %c0_143 = arith.constant 0 : index
    %155 = vector.load %arg2[%c9_142, %c0_143] : memref<32x256xbf16, #tpu.memory_space<vmem>>, vector<1x256xbf16>
    %156 = vector.broadcast %155 : vector<1x256xbf16> to vector<8x256xbf16>
    %157 = arith.mulf %154, %156 : vector<8x256xbf16>
    %c9_144 = arith.constant 9 : index
    %c0_145 = arith.constant 0 : index
    %c0_146 = arith.constant 0 : index
    %158 = vector.load %arg5[%c9_144, %c0_145, %c0_146] : memref<27x8x8xbf16, #tpu.memory_space<vmem>>, vector<1x8x8xbf16>
    %159 = vector.shape_cast %158 : vector<1x8x8xbf16> to vector<8x8xbf16>
    %cst_147 = arith.constant dense<0.000000e+00> : vector<8x256xf32>
    %160 = tpu.matmul %159, %157, %cst_147 {dimension_numbers = #tpu.dot_dimension_numbers<[1], [0], [0], [1], [0, 0, 1, 1], [], []>} : vector<8x8xbf16>, vector<8x256xbf16>, vector<8x256xf32> -> vector<8x256xf32>
    %161 = arith.addf %153, %160 : vector<8x256xf32>
    %c0_148 = arith.constant 0 : index
    %c120_149 = arith.constant 120 : index
    %162 = vector.load %arg8[%c0_148, %c120_149] : memref<8x512xbf16, #tpu.memory_space<vmem>>, vector<8x256xbf16>
    %c10_150 = arith.constant 10 : index
    %c0_151 = arith.constant 0 : index
    %163 = vector.load %arg2[%c10_150, %c0_151] : memref<32x256xbf16, #tpu.memory_space<vmem>>, vector<1x256xbf16>
    %164 = vector.broadcast %163 : vector<1x256xbf16> to vector<8x256xbf16>
    %165 = arith.mulf %162, %164 : vector<8x256xbf16>
    %c10_152 = arith.constant 10 : index
    %c0_153 = arith.constant 0 : index
    %c0_154 = arith.constant 0 : index
    %166 = vector.load %arg5[%c10_152, %c0_153, %c0_154] : memref<27x8x8xbf16, #tpu.memory_space<vmem>>, vector<1x8x8xbf16>
    %167 = vector.shape_cast %166 : vector<1x8x8xbf16> to vector<8x8xbf16>
    %cst_155 = arith.constant dense<0.000000e+00> : vector<8x256xf32>
    %168 = tpu.matmul %167, %165, %cst_155 {dimension_numbers = #tpu.dot_dimension_numbers<[1], [0], [0], [1], [0, 0, 1, 1], [], []>} : vector<8x8xbf16>, vector<8x256xbf16>, vector<8x256xf32> -> vector<8x256xf32>
    %169 = arith.addf %161, %168 : vector<8x256xf32>
    %c0_156 = arith.constant 0 : index
    %c121 = arith.constant 121 : index
    %170 = vector.load %arg8[%c0_156, %c121] : memref<8x512xbf16, #tpu.memory_space<vmem>>, vector<8x256xbf16>
    %c11 = arith.constant 11 : index
    %c0_157 = arith.constant 0 : index
    %171 = vector.load %arg2[%c11, %c0_157] : memref<32x256xbf16, #tpu.memory_space<vmem>>, vector<1x256xbf16>
    %172 = vector.broadcast %171 : vector<1x256xbf16> to vector<8x256xbf16>
    %173 = arith.mulf %170, %172 : vector<8x256xbf16>
    %c11_158 = arith.constant 11 : index
    %c0_159 = arith.constant 0 : index
    %c0_160 = arith.constant 0 : index
    %174 = vector.load %arg5[%c11_158, %c0_159, %c0_160] : memref<27x8x8xbf16, #tpu.memory_space<vmem>>, vector<1x8x8xbf16>
    %175 = vector.shape_cast %174 : vector<1x8x8xbf16> to vector<8x8xbf16>
    %cst_161 = arith.constant dense<0.000000e+00> : vector<8x256xf32>
    %176 = tpu.matmul %175, %173, %cst_161 {dimension_numbers = #tpu.dot_dimension_numbers<[1], [0], [0], [1], [0, 0, 1, 1], [], []>} : vector<8x8xbf16>, vector<8x256xbf16>, vector<8x256xf32> -> vector<8x256xf32>
    %177 = arith.addf %169, %176 : vector<8x256xf32>
    %c0_162 = arith.constant 0 : index
    %c127_163 = arith.constant 127 : index
    %178 = vector.load %arg8[%c0_162, %c127_163] : memref<8x512xbf16, #tpu.memory_space<vmem>>, vector<8x256xbf16>
    %c12_164 = arith.constant 12 : index
    %c0_165 = arith.constant 0 : index
    %179 = vector.load %arg2[%c12_164, %c0_165] : memref<32x256xbf16, #tpu.memory_space<vmem>>, vector<1x256xbf16>
    %180 = vector.broadcast %179 : vector<1x256xbf16> to vector<8x256xbf16>
    %181 = arith.mulf %178, %180 : vector<8x256xbf16>
    %c12_166 = arith.constant 12 : index
    %c0_167 = arith.constant 0 : index
    %c0_168 = arith.constant 0 : index
    %182 = vector.load %arg5[%c12_166, %c0_167, %c0_168] : memref<27x8x8xbf16, #tpu.memory_space<vmem>>, vector<1x8x8xbf16>
    %183 = vector.shape_cast %182 : vector<1x8x8xbf16> to vector<8x8xbf16>
    %cst_169 = arith.constant dense<0.000000e+00> : vector<8x256xf32>
    %184 = tpu.matmul %183, %181, %cst_169 {dimension_numbers = #tpu.dot_dimension_numbers<[1], [0], [0], [1], [0, 0, 1, 1], [], []>} : vector<8x8xbf16>, vector<8x256xbf16>, vector<8x256xf32> -> vector<8x256xf32>
    %185 = arith.addf %177, %184 : vector<8x256xf32>
    %c0_170 = arith.constant 0 : index
    %c128_171 = arith.constant 128 : index
    %186 = vector.load %arg8[%c0_170, %c128_171] : memref<8x512xbf16, #tpu.memory_space<vmem>>, vector<8x256xbf16>
    %c13 = arith.constant 13 : index
    %c0_172 = arith.constant 0 : index
    %c0_173 = arith.constant 0 : index
    %187 = vector.load %arg5[%c13, %c0_172, %c0_173] : memref<27x8x8xbf16, #tpu.memory_space<vmem>>, vector<1x8x8xbf16>
    %188 = vector.shape_cast %187 : vector<1x8x8xbf16> to vector<8x8xbf16>
    %cst_174 = arith.constant dense<0.000000e+00> : vector<8x256xf32>
    %189 = tpu.matmul %188, %186, %cst_174 {dimension_numbers = #tpu.dot_dimension_numbers<[1], [0], [0], [1], [0, 0, 1, 1], [], []>} : vector<8x8xbf16>, vector<8x256xbf16>, vector<8x256xf32> -> vector<8x256xf32>
    %190 = arith.addf %185, %189 : vector<8x256xf32>
    %c0_175 = arith.constant 0 : index
    %c129 = arith.constant 129 : index
    %191 = vector.load %arg8[%c0_175, %c129] : memref<8x512xbf16, #tpu.memory_space<vmem>>, vector<8x256xbf16>
    %c14 = arith.constant 14 : index
    %c0_176 = arith.constant 0 : index
    %192 = vector.load %arg2[%c14, %c0_176] : memref<32x256xbf16, #tpu.memory_space<vmem>>, vector<1x256xbf16>
    %193 = vector.broadcast %192 : vector<1x256xbf16> to vector<8x256xbf16>
    %194 = arith.mulf %191, %193 : vector<8x256xbf16>
    %c14_177 = arith.constant 14 : index
    %c0_178 = arith.constant 0 : index
    %c0_179 = arith.constant 0 : index
    %195 = vector.load %arg5[%c14_177, %c0_178, %c0_179] : memref<27x8x8xbf16, #tpu.memory_space<vmem>>, vector<1x8x8xbf16>
    %196 = vector.shape_cast %195 : vector<1x8x8xbf16> to vector<8x8xbf16>
    %cst_180 = arith.constant dense<0.000000e+00> : vector<8x256xf32>
    %197 = tpu.matmul %196, %194, %cst_180 {dimension_numbers = #tpu.dot_dimension_numbers<[1], [0], [0], [1], [0, 0, 1, 1], [], []>} : vector<8x8xbf16>, vector<8x256xbf16>, vector<8x256xf32> -> vector<8x256xf32>
    %198 = arith.addf %190, %197 : vector<8x256xf32>
    %c0_181 = arith.constant 0 : index
    %c135 = arith.constant 135 : index
    %199 = vector.load %arg8[%c0_181, %c135] : memref<8x512xbf16, #tpu.memory_space<vmem>>, vector<8x256xbf16>
    %c15 = arith.constant 15 : index
    %c0_182 = arith.constant 0 : index
    %200 = vector.load %arg2[%c15, %c0_182] : memref<32x256xbf16, #tpu.memory_space<vmem>>, vector<1x256xbf16>
    %201 = vector.broadcast %200 : vector<1x256xbf16> to vector<8x256xbf16>
    %202 = arith.mulf %199, %201 : vector<8x256xbf16>
    %c15_183 = arith.constant 15 : index
    %c0_184 = arith.constant 0 : index
    %c0_185 = arith.constant 0 : index
    %203 = vector.load %arg5[%c15_183, %c0_184, %c0_185] : memref<27x8x8xbf16, #tpu.memory_space<vmem>>, vector<1x8x8xbf16>
    %204 = vector.shape_cast %203 : vector<1x8x8xbf16> to vector<8x8xbf16>
    %cst_186 = arith.constant dense<0.000000e+00> : vector<8x256xf32>
    %205 = tpu.matmul %204, %202, %cst_186 {dimension_numbers = #tpu.dot_dimension_numbers<[1], [0], [0], [1], [0, 0, 1, 1], [], []>} : vector<8x8xbf16>, vector<8x256xbf16>, vector<8x256xf32> -> vector<8x256xf32>
    %206 = arith.addf %198, %205 : vector<8x256xf32>
    %c0_187 = arith.constant 0 : index
    %c136 = arith.constant 136 : index
    %207 = vector.load %arg8[%c0_187, %c136] : memref<8x512xbf16, #tpu.memory_space<vmem>>, vector<8x256xbf16>
    %c16 = arith.constant 16 : index
    %c0_188 = arith.constant 0 : index
    %208 = vector.load %arg2[%c16, %c0_188] : memref<32x256xbf16, #tpu.memory_space<vmem>>, vector<1x256xbf16>
    %209 = vector.broadcast %208 : vector<1x256xbf16> to vector<8x256xbf16>
    %210 = arith.mulf %207, %209 : vector<8x256xbf16>
    %c16_189 = arith.constant 16 : index
    %c0_190 = arith.constant 0 : index
    %c0_191 = arith.constant 0 : index
    %211 = vector.load %arg5[%c16_189, %c0_190, %c0_191] : memref<27x8x8xbf16, #tpu.memory_space<vmem>>, vector<1x8x8xbf16>
    %212 = vector.shape_cast %211 : vector<1x8x8xbf16> to vector<8x8xbf16>
    %cst_192 = arith.constant dense<0.000000e+00> : vector<8x256xf32>
    %213 = tpu.matmul %212, %210, %cst_192 {dimension_numbers = #tpu.dot_dimension_numbers<[1], [0], [0], [1], [0, 0, 1, 1], [], []>} : vector<8x8xbf16>, vector<8x256xbf16>, vector<8x256xf32> -> vector<8x256xf32>
    %214 = arith.addf %206, %213 : vector<8x256xf32>
    %c0_193 = arith.constant 0 : index
    %c137 = arith.constant 137 : index
    %215 = vector.load %arg8[%c0_193, %c137] : memref<8x512xbf16, #tpu.memory_space<vmem>>, vector<8x256xbf16>
    %c17 = arith.constant 17 : index
    %c0_194 = arith.constant 0 : index
    %216 = vector.load %arg2[%c17, %c0_194] : memref<32x256xbf16, #tpu.memory_space<vmem>>, vector<1x256xbf16>
    %217 = vector.broadcast %216 : vector<1x256xbf16> to vector<8x256xbf16>
    %218 = arith.mulf %215, %217 : vector<8x256xbf16>
    %c17_195 = arith.constant 17 : index
    %c0_196 = arith.constant 0 : index
    %c0_197 = arith.constant 0 : index
    %219 = vector.load %arg5[%c17_195, %c0_196, %c0_197] : memref<27x8x8xbf16, #tpu.memory_space<vmem>>, vector<1x8x8xbf16>
    %220 = vector.shape_cast %219 : vector<1x8x8xbf16> to vector<8x8xbf16>
    %cst_198 = arith.constant dense<0.000000e+00> : vector<8x256xf32>
    %221 = tpu.matmul %220, %218, %cst_198 {dimension_numbers = #tpu.dot_dimension_numbers<[1], [0], [0], [1], [0, 0, 1, 1], [], []>} : vector<8x8xbf16>, vector<8x256xbf16>, vector<8x256xf32> -> vector<8x256xf32>
    %222 = arith.addf %214, %221 : vector<8x256xf32>
    %c0_199 = arith.constant 0 : index
    %c183 = arith.constant 183 : index
    %223 = vector.load %arg8[%c0_199, %c183] : memref<8x512xbf16, #tpu.memory_space<vmem>>, vector<8x256xbf16>
    %c18 = arith.constant 18 : index
    %c0_200 = arith.constant 0 : index
    %224 = vector.load %arg2[%c18, %c0_200] : memref<32x256xbf16, #tpu.memory_space<vmem>>, vector<1x256xbf16>
    %225 = vector.broadcast %224 : vector<1x256xbf16> to vector<8x256xbf16>
    %226 = arith.mulf %223, %225 : vector<8x256xbf16>
    %c18_201 = arith.constant 18 : index
    %c0_202 = arith.constant 0 : index
    %c0_203 = arith.constant 0 : index
    %227 = vector.load %arg5[%c18_201, %c0_202, %c0_203] : memref<27x8x8xbf16, #tpu.memory_space<vmem>>, vector<1x8x8xbf16>
    %228 = vector.shape_cast %227 : vector<1x8x8xbf16> to vector<8x8xbf16>
    %cst_204 = arith.constant dense<0.000000e+00> : vector<8x256xf32>
    %229 = tpu.matmul %228, %226, %cst_204 {dimension_numbers = #tpu.dot_dimension_numbers<[1], [0], [0], [1], [0, 0, 1, 1], [], []>} : vector<8x8xbf16>, vector<8x256xbf16>, vector<8x256xf32> -> vector<8x256xf32>
    %230 = arith.addf %222, %229 : vector<8x256xf32>
    %c0_205 = arith.constant 0 : index
    %c184 = arith.constant 184 : index
    %231 = vector.load %arg8[%c0_205, %c184] : memref<8x512xbf16, #tpu.memory_space<vmem>>, vector<8x256xbf16>
    %c19 = arith.constant 19 : index
    %c0_206 = arith.constant 0 : index
    %232 = vector.load %arg2[%c19, %c0_206] : memref<32x256xbf16, #tpu.memory_space<vmem>>, vector<1x256xbf16>
    %233 = vector.broadcast %232 : vector<1x256xbf16> to vector<8x256xbf16>
    %234 = arith.mulf %231, %233 : vector<8x256xbf16>
    %c19_207 = arith.constant 19 : index
    %c0_208 = arith.constant 0 : index
    %c0_209 = arith.constant 0 : index
    %235 = vector.load %arg5[%c19_207, %c0_208, %c0_209] : memref<27x8x8xbf16, #tpu.memory_space<vmem>>, vector<1x8x8xbf16>
    %236 = vector.shape_cast %235 : vector<1x8x8xbf16> to vector<8x8xbf16>
    %cst_210 = arith.constant dense<0.000000e+00> : vector<8x256xf32>
    %237 = tpu.matmul %236, %234, %cst_210 {dimension_numbers = #tpu.dot_dimension_numbers<[1], [0], [0], [1], [0, 0, 1, 1], [], []>} : vector<8x8xbf16>, vector<8x256xbf16>, vector<8x256xf32> -> vector<8x256xf32>
    %238 = arith.addf %230, %237 : vector<8x256xf32>
    %c0_211 = arith.constant 0 : index
    %c185 = arith.constant 185 : index
    %239 = vector.load %arg8[%c0_211, %c185] : memref<8x512xbf16, #tpu.memory_space<vmem>>, vector<8x256xbf16>
    %c20 = arith.constant 20 : index
    %c0_212 = arith.constant 0 : index
    %240 = vector.load %arg2[%c20, %c0_212] : memref<32x256xbf16, #tpu.memory_space<vmem>>, vector<1x256xbf16>
    %241 = vector.broadcast %240 : vector<1x256xbf16> to vector<8x256xbf16>
    %242 = arith.mulf %239, %241 : vector<8x256xbf16>
    %c20_213 = arith.constant 20 : index
    %c0_214 = arith.constant 0 : index
    %c0_215 = arith.constant 0 : index
    %243 = vector.load %arg5[%c20_213, %c0_214, %c0_215] : memref<27x8x8xbf16, #tpu.memory_space<vmem>>, vector<1x8x8xbf16>
    %244 = vector.shape_cast %243 : vector<1x8x8xbf16> to vector<8x8xbf16>
    %cst_216 = arith.constant dense<0.000000e+00> : vector<8x256xf32>
    %245 = tpu.matmul %244, %242, %cst_216 {dimension_numbers = #tpu.dot_dimension_numbers<[1], [0], [0], [1], [0, 0, 1, 1], [], []>} : vector<8x8xbf16>, vector<8x256xbf16>, vector<8x256xf32> -> vector<8x256xf32>
    %246 = arith.addf %238, %245 : vector<8x256xf32>
    %c0_217 = arith.constant 0 : index
    %c191 = arith.constant 191 : index
    %247 = vector.load %arg8[%c0_217, %c191] : memref<8x512xbf16, #tpu.memory_space<vmem>>, vector<8x256xbf16>
    %c21 = arith.constant 21 : index
    %c0_218 = arith.constant 0 : index
    %248 = vector.load %arg2[%c21, %c0_218] : memref<32x256xbf16, #tpu.memory_space<vmem>>, vector<1x256xbf16>
    %249 = vector.broadcast %248 : vector<1x256xbf16> to vector<8x256xbf16>
    %250 = arith.mulf %247, %249 : vector<8x256xbf16>
    %c21_219 = arith.constant 21 : index
    %c0_220 = arith.constant 0 : index
    %c0_221 = arith.constant 0 : index
    %251 = vector.load %arg5[%c21_219, %c0_220, %c0_221] : memref<27x8x8xbf16, #tpu.memory_space<vmem>>, vector<1x8x8xbf16>
    %252 = vector.shape_cast %251 : vector<1x8x8xbf16> to vector<8x8xbf16>
    %cst_222 = arith.constant dense<0.000000e+00> : vector<8x256xf32>
    %253 = tpu.matmul %252, %250, %cst_222 {dimension_numbers = #tpu.dot_dimension_numbers<[1], [0], [0], [1], [0, 0, 1, 1], [], []>} : vector<8x8xbf16>, vector<8x256xbf16>, vector<8x256xf32> -> vector<8x256xf32>
    %254 = arith.addf %246, %253 : vector<8x256xf32>
    %c0_223 = arith.constant 0 : index
    %c192 = arith.constant 192 : index
    %255 = vector.load %arg8[%c0_223, %c192] : memref<8x512xbf16, #tpu.memory_space<vmem>>, vector<8x256xbf16>
    %c22 = arith.constant 22 : index
    %c0_224 = arith.constant 0 : index
    %256 = vector.load %arg2[%c22, %c0_224] : memref<32x256xbf16, #tpu.memory_space<vmem>>, vector<1x256xbf16>
    %257 = vector.broadcast %256 : vector<1x256xbf16> to vector<8x256xbf16>
    %258 = arith.mulf %255, %257 : vector<8x256xbf16>
    %c22_225 = arith.constant 22 : index
    %c0_226 = arith.constant 0 : index
    %c0_227 = arith.constant 0 : index
    %259 = vector.load %arg5[%c22_225, %c0_226, %c0_227] : memref<27x8x8xbf16, #tpu.memory_space<vmem>>, vector<1x8x8xbf16>
    %260 = vector.shape_cast %259 : vector<1x8x8xbf16> to vector<8x8xbf16>
    %cst_228 = arith.constant dense<0.000000e+00> : vector<8x256xf32>
    %261 = tpu.matmul %260, %258, %cst_228 {dimension_numbers = #tpu.dot_dimension_numbers<[1], [0], [0], [1], [0, 0, 1, 1], [], []>} : vector<8x8xbf16>, vector<8x256xbf16>, vector<8x256xf32> -> vector<8x256xf32>
    %262 = arith.addf %254, %261 : vector<8x256xf32>
    %c0_229 = arith.constant 0 : index
    %c193 = arith.constant 193 : index
    %263 = vector.load %arg8[%c0_229, %c193] : memref<8x512xbf16, #tpu.memory_space<vmem>>, vector<8x256xbf16>
    %c23 = arith.constant 23 : index
    %c0_230 = arith.constant 0 : index
    %264 = vector.load %arg2[%c23, %c0_230] : memref<32x256xbf16, #tpu.memory_space<vmem>>, vector<1x256xbf16>
    %265 = vector.broadcast %264 : vector<1x256xbf16> to vector<8x256xbf16>
    %266 = arith.mulf %263, %265 : vector<8x256xbf16>
    %c23_231 = arith.constant 23 : index
    %c0_232 = arith.constant 0 : index
    %c0_233 = arith.constant 0 : index
    %267 = vector.load %arg5[%c23_231, %c0_232, %c0_233] : memref<27x8x8xbf16, #tpu.memory_space<vmem>>, vector<1x8x8xbf16>
    %268 = vector.shape_cast %267 : vector<1x8x8xbf16> to vector<8x8xbf16>
    %cst_234 = arith.constant dense<0.000000e+00> : vector<8x256xf32>
    %269 = tpu.matmul %268, %266, %cst_234 {dimension_numbers = #tpu.dot_dimension_numbers<[1], [0], [0], [1], [0, 0, 1, 1], [], []>} : vector<8x8xbf16>, vector<8x256xbf16>, vector<8x256xf32> -> vector<8x256xf32>
    %270 = arith.addf %262, %269 : vector<8x256xf32>
    %c0_235 = arith.constant 0 : index
    %c199 = arith.constant 199 : index
    %271 = vector.load %arg8[%c0_235, %c199] : memref<8x512xbf16, #tpu.memory_space<vmem>>, vector<8x256xbf16>
    %c24 = arith.constant 24 : index
    %c0_236 = arith.constant 0 : index
    %272 = vector.load %arg2[%c24, %c0_236] : memref<32x256xbf16, #tpu.memory_space<vmem>>, vector<1x256xbf16>
    %273 = vector.broadcast %272 : vector<1x256xbf16> to vector<8x256xbf16>
    %274 = arith.mulf %271, %273 : vector<8x256xbf16>
    %c24_237 = arith.constant 24 : index
    %c0_238 = arith.constant 0 : index
    %c0_239 = arith.constant 0 : index
    %275 = vector.load %arg5[%c24_237, %c0_238, %c0_239] : memref<27x8x8xbf16, #tpu.memory_space<vmem>>, vector<1x8x8xbf16>
    %276 = vector.shape_cast %275 : vector<1x8x8xbf16> to vector<8x8xbf16>
    %cst_240 = arith.constant dense<0.000000e+00> : vector<8x256xf32>
    %277 = tpu.matmul %276, %274, %cst_240 {dimension_numbers = #tpu.dot_dimension_numbers<[1], [0], [0], [1], [0, 0, 1, 1], [], []>} : vector<8x8xbf16>, vector<8x256xbf16>, vector<8x256xf32> -> vector<8x256xf32>
    %278 = arith.addf %270, %277 : vector<8x256xf32>
    %c0_241 = arith.constant 0 : index
    %c200 = arith.constant 200 : index
    %279 = vector.load %arg8[%c0_241, %c200] : memref<8x512xbf16, #tpu.memory_space<vmem>>, vector<8x256xbf16>
    %c25 = arith.constant 25 : index
    %c0_242 = arith.constant 0 : index
    %280 = vector.load %arg2[%c25, %c0_242] : memref<32x256xbf16, #tpu.memory_space<vmem>>, vector<1x256xbf16>
    %281 = vector.broadcast %280 : vector<1x256xbf16> to vector<8x256xbf16>
    %282 = arith.mulf %279, %281 : vector<8x256xbf16>
    %c25_243 = arith.constant 25 : index
    %c0_244 = arith.constant 0 : index
    %c0_245 = arith.constant 0 : index
    %283 = vector.load %arg5[%c25_243, %c0_244, %c0_245] : memref<27x8x8xbf16, #tpu.memory_space<vmem>>, vector<1x8x8xbf16>
    %284 = vector.shape_cast %283 : vector<1x8x8xbf16> to vector<8x8xbf16>
    %cst_246 = arith.constant dense<0.000000e+00> : vector<8x256xf32>
    %285 = tpu.matmul %284, %282, %cst_246 {dimension_numbers = #tpu.dot_dimension_numbers<[1], [0], [0], [1], [0, 0, 1, 1], [], []>} : vector<8x8xbf16>, vector<8x256xbf16>, vector<8x256xf32> -> vector<8x256xf32>
    %286 = arith.addf %278, %285 : vector<8x256xf32>
    %c0_247 = arith.constant 0 : index
    %c201 = arith.constant 201 : index
    %287 = vector.load %arg8[%c0_247, %c201] : memref<8x512xbf16, #tpu.memory_space<vmem>>, vector<8x256xbf16>
    %c26 = arith.constant 26 : index
    %c0_248 = arith.constant 0 : index
    %288 = vector.load %arg2[%c26, %c0_248] : memref<32x256xbf16, #tpu.memory_space<vmem>>, vector<1x256xbf16>
    %289 = vector.broadcast %288 : vector<1x256xbf16> to vector<8x256xbf16>
    %290 = arith.mulf %287, %289 : vector<8x256xbf16>
    %c26_249 = arith.constant 26 : index
    %c0_250 = arith.constant 0 : index
    %c0_251 = arith.constant 0 : index
    %291 = vector.load %arg5[%c26_249, %c0_250, %c0_251] : memref<27x8x8xbf16, #tpu.memory_space<vmem>>, vector<1x8x8xbf16>
    %292 = vector.shape_cast %291 : vector<1x8x8xbf16> to vector<8x8xbf16>
    %cst_252 = arith.constant dense<0.000000e+00> : vector<8x256xf32>
    %293 = tpu.matmul %292, %290, %cst_252 {dimension_numbers = #tpu.dot_dimension_numbers<[1], [0], [0], [1], [0, 0, 1, 1], [], []>} : vector<8x8xbf16>, vector<8x256xbf16>, vector<8x256xf32> -> vector<8x256xf32>
    %294 = arith.addf %286, %293 : vector<8x256xf32>
    %c0_253 = arith.constant 0 : index
    %c0_254 = arith.constant 0 : index
    %295 = vector.load %arg6[%c0_253, %c0_254] : memref<8x1xf32, #tpu.memory_space<vmem>>, vector<8x1xf32>
    %296 = vector.broadcast %295 : vector<8x1xf32> to vector<8x256xf32>
    %297 = arith.addf %294, %296 : vector<8x256xf32>
    %cst_255 = arith.constant 0.000000e+00 : f32
    %298 = vector.broadcast %cst_255 : f32 to vector<8x256xf32>
    %299 = arith.maximumf %297, %298 : vector<8x256xf32>
    %c0_256 = arith.constant 0 : index
    %c0_257 = arith.constant 0 : index
    %c0_258 = arith.constant 0 : index
    %300 = vector.load %arg7[%c0_256, %c0_257, %c0_258] : memref<1x8x256xf32, #tpu.memory_space<vmem>>, vector<1x8x256xf32>
    %301 = vector.shape_cast %300 : vector<1x8x256xf32> to vector<8x256xf32>
    %302 = vector.shape_cast %299 : vector<8x256xf32> to vector<1x8x256xf32>
    tpu.vector_store %arg7[%c0_256, %c0_257, %c0_258], %302 {strides = array<i32>} : memref<1x8x256xf32, #tpu.memory_space<vmem>>, vector<1x8x256xf32>,
    return
  }
  func.func @transform_0(%arg0: i32) -> (i32, i32, i32, i32) {
    %c0_i32 = arith.constant 0 : i32
    %c0_i32_0 = arith.constant 0 : i32
    %c0_i32_1 = arith.constant 0 : i32
    %c0_i32_2 = arith.constant 0 : i32
    return %arg0, %c0_i32, %c0_i32_0, %c0_i32_1 : i32, i32, i32, i32
  }
  func.func @transform_1(%arg0: i32) -> (i32, i32) {
    %c0_i32 = arith.constant 0 : i32
    %c0_i32_0 = arith.constant 0 : i32
    %c0_i32_1 = arith.constant 0 : i32
    return %c0_i32, %c0_i32_0 : i32, i32
  }
  func.func @transform_2(%arg0: i32) -> (i32, i32, i32) {
    %c0_i32 = arith.constant 0 : i32
    %c0_i32_0 = arith.constant 0 : i32
    %c0_i32_1 = arith.constant 0 : i32
    %c0_i32_2 = arith.constant 0 : i32
    return %c0_i32, %c0_i32_0, %c0_i32_1 : i32, i32, i32
  }
  func.func @transform_3(%arg0: i32) -> (i32, i32) {
    %c0_i32 = arith.constant 0 : i32
    %c0_i32_0 = arith.constant 0 : i32
    %c0_i32_1 = arith.constant 0 : i32
    return %c0_i32, %c0_i32_0 : i32, i32
  }
  func.func @transform_4(%arg0: i32) -> (i32, i32, i32) {
    %c0_i32 = arith.constant 0 : i32
    %c0_i32_0 = arith.constant 0 : i32
    %c0_i32_1 = arith.constant 0 : i32
    %c0_i32_2 = arith.constant 0 : i32
    return %c0_i32, %c0_i32_0, %c0_i32_1 : i32, i32, i32
  }
  func.func @transform_5(%arg0: i32) -> (i32, i32) {
    %c0_i32 = arith.constant 0 : i32
    %c0_i32_0 = arith.constant 0 : i32
    %c0_i32_1 = arith.constant 0 : i32
    return %c0_i32, %c0_i32_0 : i32, i32
  }
  func.func @transform_6(%arg0: i32) -> (i32, i32, i32) {
    %c0_i32 = arith.constant 0 : i32
    %c0_i32_0 = arith.constant 0 : i32
    %c0_i32_1 = arith.constant 0 : i32
    return %arg0, %c0_i32, %c0_i32_0 : i32, i32, i32
  }
}

</mosaic_0001>

<bundles_post_ra>
// kernel: double_conv_down.1
= control target key start
LH: loop header
LB: loop body
LE: loop exit
PB: predicated region body
PF: predicated region fallthrough
CT: control target
= control target key end

     0   :  { %s4151_s21 = smov 0   ;;  %s5080_s0 = inlined_call_operand.vmem [shape: bf16[2,4,8,384], index: 0, kind: input, shape index: {}]   ;;  %s5081_s1 = inlined_call_operand.vmem [shape: bf16[32,256], index: 1, kind: input, shape index: {}]   ;;  %s5082_s2 = inlined_call_operand.vmem [shape: bf16[9,8,8], index: 2, kind: input, shape index: {}]   ;;  %s5083_s3 = inlined_call_operand.vmem [shape: f32[8,1], index: 3, kind: input, shape index: {}]   ;;  %s5084_s4 = inlined_call_operand.vmem [shape: bf16[27,8,8], index: 4, kind: input, shape index: {}]   ;;  %s5085_s5 = inlined_call_operand.vmem [shape: f32[8,1], index: 5, kind: input, shape index: {}]   ;;  %s5086_s6 = inlined_call_operand.vmem [shape: f32[2,8,256], index: 6, kind: output, shape index: {}]  }
   0x1 LB: > { %s3724_s22 = sadd.s32 4294967295, %s4096_s21   ;;  %p3728_p0 = scmp.ge.s32.totalorder %s4096_s21, 1  ;;  %s4096_s21 = sphi %s4151_s21, %s16_s21  }
   0x2   : > { %p212_p1 = scmp.lt.s32.totalorder %s4096_s21, 3 }
   0x4   : > { %p213_p2 = pnand %p3728_p0, %p212_p1 }
   0x5   : > { %v266_v0 = vlaneseq (!%p213_p2)  ;;  %v296_v1 = vld [vmem:[%s5081_s1 + $0x8] sm:$0x22] (!%p213_p2)  ;;  %v256_v2 = vld [vmem:[%s5081_s1 + $0x8] sm:$0x11] (!%p213_p2)  ;;  %v543_v7 = vld [vmem:[%s5081_s1 + $0x8] sm:$0x44] (!%p213_p2) }
   0x6   : > { %216 = sbr.rel (%p213_p2) target bundleno = 1021 (0x3fd), region = 44  ;;  %v3739_v3 = vcombine.low (!%p213_p2), %v296_v1, %v296_v1  ;;  %v3740_v4 = vcombine.high (!%p213_p2), %v296_v1, %v296_v1  ;;  %v3734_v5 = vcombine.low (!%p213_p2), %v256_v2, %v256_v2  ;;  %v3735_v6 = vcombine.high (!%p213_p2), %v256_v2, %v256_v2  ;;  %s4098_s29 = smov (!%p213_p2), 120  }
   0x7   : > { %v4168_v8 = vshrl.u32 (!%p213_p2), %v266_v0, 7  ;;  %v3761_v9 = vcombine.low (!%p213_p2), %v543_v7, %v543_v7  ;;  %v3762_v10 = vcombine.high (!%p213_p2), %v543_v7, %v543_v7  ;;  %s4099_s30 = smov (!%p213_p2), 127   ;;  %s4100_s7 = smov (!%p213_p2), 119   ;;  %vm324_vm0 = vcmask (!%p213_p2), 982016  }
   0x8   : > { %v303_v11 = vpack.i.b16 (!%p213_p2), %v3739_v3, %v3739_v3  ;;  %v310_v12 = vpack.i.b16 (!%p213_p2), %v3740_v4, %v3740_v4  ;;  %v263_v13 = vshrl.u32 (!%p213_p2), %v3734_v5, 16  ;;  %v271_v14 = vshrl.u32 (!%p213_p2), %v3735_v6, 16  ;;  %p242_p3 = scmp.lt.s32.totalorder (!%p213_p2), %s3724_s22, 1  ;;  %s4102_s12 = smov (!%p213_p2), 8  }
   0x9   : > { %v4171_v15 = vsub.s32 (!%p213_p2), 1, %v4168_v8  ;;  %v4174_v16 = vsub.s32 (!%p213_p2), 0, %v4168_v8  ;;  %v550_v17 = vpack.i.b16 (!%p213_p2), %v3761_v9, %v3761_v9  ;;  %v4177_v18 = vsub.s32 (!%p213_p2), 2, %v4168_v8  ;;  %s4103_s13 = smov (!%p213_p2), 9   ;;  %s5087_s14 = smov (!%p213_p2), 1  }
   0xa   : > { %v264_v19 = vpack.i.b16 (!%p213_p2), %v263_v13, %v263_v13  ;;  %v272_v20 = vpack.i.b16 (!%p213_p2), %v271_v14, %v271_v14  ;;  %v557_v21 = vpack.i.b16 (!%p213_p2), %v3762_v10, %v3762_v10  ;;  %v4101_v39 = vmov (!%p213_p2), 0   ;;  %v983_v9 = vld [vmem:[%s5081_s1] sm:$0x11] (!%p213_p2)  ;;  %v1182_v13 = vld [vmem:[%s5081_s1] sm:$0x22] (!%p213_p2)  ;;  %s4105_s10 = smov (!%p213_p2), 56  }
   0xb   : > { %v308_v22 = vrot.slane (!%p213_p2), %v303_v11, %v4171_v15  ;;  %v315_v23 = vrot.slane (!%p213_p2), %v310_v12, %v4171_v15  ;;  %v555_v24 = vrot.slane (!%p213_p2), %v550_v17, %v4177_v18  ;;  %392 = vmatprep.mubr.bf16.mxu0 (!%p213_p2), %v4101_v39  ;;  %970 = vst [vmem:[#allocation2] sm:$0xf] (!%p213_p2), %v4101_v39  ;;  %971 = vst [vmem:[#allocation2 + $0xc] sm:$0xf] (!%p213_p2), %v4101_v39  ;;  %vm286_vm1 = vcmask (!%p213_p2), 973824   ;;  %v960_v10 = vld [vmem:[%s5083_s3] sm:$0xff] (!%p213_p2) }
   0xc   : > { %v269_v25 = vrot.slane (!%p213_p2), %v264_v19, %v4174_v16  ;;  %v277_v26 = vrot.slane (!%p213_p2), %v272_v20, %v4174_v16  ;;  %v562_v27 = vrot.slane (!%p213_p2), %v557_v21, %v4177_v18  ;;  %459 = vmatprep.mubr.bf16.mxu1 (!%p213_p2), %v4101_v39  ;;  %4045 = vset.pattern.permute.xlu0 (!%p213_p2), %v4101_v39  ;;  %vm571_vm2 = vcmask (!%p213_p2), 1039360   ;;  %v1386_v14 = vld [vmem:[%s5081_s1] sm:$0x44] (!%p213_p2)  ;;  %s4106_s15 = smov (!%p213_p2), 55   ;;  %s4107_s16 = smov (!%p213_p2), 57  }
   0xd   : > { %v3741_v28 = vcombine.low %v308_v22, %v315_v23  ;;  %s5100_s22 = smov (!%p242_p3, %s3724_s22), 1  ;;  %v3800_v11 = vcombine.low %v983_v9, %v983_v9  ;;  %v3801_v12 = vcombine.high %v983_v9, %v983_v9  ;;  %v3815_v17 = vcombine.low %v1182_v13, %v1182_v13  ;;  %s4108_s19 = smov 63  }
   0xe   : > { %v3763_v29 = vcombine.low %v555_v24, %v562_v27  ;;  %v3736_v30 = vcombine.low %v269_v25, %v277_v26  ;;  %s4018_s8 = smul.u32 48, %s5100_s22  ;;  %v3816_v19 = vcombine.high %v1182_v13, %v1182_v13  ;;  %v3831_v20 = vcombine.low %v1386_v14, %v1386_v14  ;;  %s4109_s20 = smov 64  }
   0xf   : > { %321 = vrot.lane.b32.xlu0 %v3741_v28, %s4098_s29  ;;  %v3832_v21 = vcombine.high %v1386_v14, %v1386_v14  ;;  %v1018_v22 = vshrl.u32 %v3800_v11, 16  ;;  %v1025_v23 = vshrl.u32 %v3801_v12, 16  ;;  %v990_v24 = vpack.i.b16 %v3800_v11, %v3800_v11  ;;  %v2354_v14 = vld [vmem:[%s5081_s1 + $0x8] sm:$0x88]  ;;  %s4110_s23 = smov 65   ;;  %s4111_s28 = smov 71  }
  0x10   : > { %568 = vrot.lane.b32.xlu1 %v3763_v29, %s4099_s30  ;;  %s4198_s11 = scalar_lea.vmem %s5080_s0, %s4018_s8  ;;  %v997_v25 = vpack.i.b16 %v3801_v12, %v3801_v12  ;;  %v1287_v26 = vshrl.u32 %v3815_v17, 16  ;;  %v1294_v27 = vshrl.u32 %v3816_v19, 16  ;;  %v1490_v28 = vshrl.u32 %v3831_v20, 16  ;;  %s4112_s8 = smov 72  }
  0x11   : > { %v3738_v32 = vld [vmem:[%s4198_s11 + $0x20] sm:$0xf]  ;;  %v3737_v33 = vld [vmem:[%s4198_s11 + $0x18] sm:$0xff]  ;;  %v3732_v42 = vld [vmem:[%s4198_s11 + $0x24] sm:$0xff]  ;;  %v1497_v29 = vshrl.u32 %v3832_v21, 16  ;;  %s4113_s9 = smov 73  }
  0x12   : > { %v3733_v44 = vld [vmem:[%s4198_s11 + $0x2c] sm:$0xf]  ;;  %v3760_v61 = vld [vmem:[%s4198_s11 + $0x14] sm:$0xf]  ;;  %s4114_s24 = smov 121   ;;  %s4115_s27 = smov 7  }
  0x13   : > { %283 = vrot.lane.b32.xlu0 %v3736_v30, %s4100_s7  ;;  %v3759_v53 = vld [vmem:[%s4198_s11 + $0xc] sm:$0xff]  ;;  %v1587_v30 = vld [vmem:[%s5081_s1] sm:$0x88]  ;;  %vm346_vm3 = vcmask 64512   ;;  %vm353_vm4 = vcmask 1043456   ;;  %vm415_vm5 = vcmask 72704  }
  0x14   : > { %vm5089_vm6 = vcmask 7168   ;;  %vm5091_vm7 = vcmask 449536   ;;  %vm1040_vm8 = vcmask 457728   ;;  %vm1210_vm9 = vcmask 465920  }
  0x15   : > { %vm1309_vm10 = vcmask 515072   ;;  %vm1414_vm11 = vcmask 523264   ;;  %vm1331_vm12 = vcmask 531456   ;;  %vm1232_vm13 = vcmask 580608  }
  0x16   : > { %vm5090_vm14 = vcmask 56320   ;;  %vm1062_vm15 = vcmask 588800  }
  0x81   : > { %v322_v31 = vpop.permute.xlu0 %321 }
  0x82   : > { %v323_v34 = vrot.slane %v322_v31, 4  ;;  %v569_v45 = vpop.permute.xlu1 %568 }
  0x83   : > { %v570_v50 = vrot.slane %v569_v45, 4 }
  0x84   : > { %v325_v35 = vsel %vm324_vm0, %v323_v34, %v322_v31  ;;  %v329_v36 = vmul.bf16 %v3738_v32, %v323_v34  ;;  %v469_v59 = vmul.bf16 %v3733_v44, %v323_v34  ;;  %v1019_v31 = vpack.i.b16 %v1018_v22, %v1018_v22 }
  0x85   : > { %v328_v37 = vmul.bf16 %v3737_v33, %v325_v35  ;;  %v284_v38 = vpop.permute.xlu0 %283  ;;  %v468_v47 = vmul.bf16 %v3732_v42, %v325_v35  ;;  %v572_v54 = vsel %vm571_vm2, %v570_v50, %v569_v45  ;;  %v576_v0 = vmul.bf16 %v3760_v61, %v570_v50 }
  0x86   : > { %v285_v40 = vrot.slane %v284_v38, 4  ;;  %v3745_v41 = vcombine.low %v329_v36, %v329_v36  ;;  %v575_v57 = vmul.bf16 %v3759_v53, %v572_v54  ;;  %v3756_v63 = vcombine.low %v469_v59, %v469_v59 }
  0x87   : > { %v3744_v43 = vcombine.high %v328_v37, %v328_v37  ;;  %v3743_v48 = vcombine.low %v328_v37, %v328_v37  ;;  %v3754_v55 = vcombine.low %v468_v47, %v468_v47  ;;  %v3755_v56 = vcombine.high %v468_v47, %v468_v47 }
  0x88   : > { %344 = vrot.lane.b32.xlu1 %v3745_v41, %s4102_s12  ;;  %v291_v46 = vmul.bf16 %v3733_v44, %v285_v40  ;;  %v287_v51 = vsel %vm286_vm1, %v285_v40, %v284_v38  ;;  %v3765_v62 = vcombine.low %v575_v57, %v575_v57  ;;  %v768_v1 = vmul.bf16 %v3732_v42, %v572_v54 }
  0x89   : > { %342 = vrot.lane.b32.xlu0 %v3744_v43, %s4102_s12  ;;  %v290_v52 = vmul.bf16 %v3732_v42, %v287_v51  ;;  %v3766_v2 = vcombine.high %v575_v57, %v575_v57  ;;  %v3767_v3 = vcombine.low %v576_v0, %v576_v0  ;;  %v769_v5 = vmul.bf16 %v3733_v44, %v570_v50  ;;  %v1787_v44 = vld [vmem:[%s5081_s1 + $0x8] sm:$0x11] }
  0x8a   : > { %v3750_v49 = vcombine.low %v291_v46, %v291_v46  ;;  %v3782_v4 = vcombine.low %v768_v1, %v768_v1  ;;  %v3783_v6 = vcombine.high %v768_v1, %v768_v1  ;;  %v1026_v32 = vpack.i.b16 %v1025_v23, %v1025_v23 }
  0x8b   : > { %v3749_v58 = vcombine.high %v290_v52, %v290_v52  ;;  %v3748_v60 = vcombine.low %v290_v52, %v290_v52  ;;  %v3784_v7 = vcombine.low %v769_v5, %v769_v5  ;;  %v995_v33 = vrot.slane %v990_v24, %v4174_v16  ;;  %v1987_v52 = vld [vmem:[%s5081_s1 + $0x8] sm:$0x22] }
  0x8c   : > { %340 = vrot.lane.b32.xlu1 %v3743_v48, %s4102_s12  ;;  %v1002_v34 = vrot.slane %v997_v25, %v4174_v16  ;;  %v1288_v35 = vpack.i.b16 %v1287_v26, %v1287_v26  ;;  %v1295_v36 = vpack.i.b16 %v1294_v27, %v1294_v27  ;;  %v1024_v37 = vrot.slane %v1019_v31, %v4174_v16 }
  0x8d   : > { %413 = vrot.lane.b32.xlu0 %v3750_v49, %s4103_s13  ;;  %v1031_v38 = vrot.slane %v1026_v32, %v4174_v16  ;;  %v3847_v40 = vcombine.low %v1587_v30, %v1587_v30  ;;  %v1491_v42 = vpack.i.b16 %v1490_v28, %v1490_v28  ;;  %v1498_v43 = vpack.i.b16 %v1497_v29, %v1497_v29 }
  0x8e   : > { %v1293_v41 = vrot.slane %v1288_v35, %v4171_v15  ;;  %v1300_v46 = vrot.slane %v1295_v36, %v4171_v15  ;;  %v3848_v47 = vcombine.high %v1587_v30, %v1587_v30  ;;  %v1189_v48 = vpack.i.b16 %v3815_v17, %v3815_v17 }
  0x8f   : > { %v3803_v45 = vcombine.low %v1024_v37, %v1031_v38  ;;  %v3802_v49 = vcombine.low %v995_v33, %v1002_v34  ;;  %v1690_v50 = vshrl.u32 %v3847_v40, 16  ;;  %v1196_v51 = vpack.i.b16 %v3816_v19, %v3816_v19  ;;  %v2554_v38 = vld [vmem:[%s5081_s1 + $0x10] sm:$0x11] }
  0x90   : > { %480 = vrot.lane.b32.xlu1 %v3754_v55, %s4102_s12  ;;  %v1697_v53 = vshrl.u32 %v3848_v47, 16  ;;  %v1194_v54 = vrot.slane %v1189_v48, %v4171_v15  ;;  %v3863_v55 = vcombine.low %v1787_v44, %v1787_v44  ;;  %v4259_v57 = vsub.s32 3, %v4168_v8 }
  0x91   : > { %482 = vrot.lane.b32.xlu0 %v3755_v56, %s4102_s12  ;;  %v3864_v56 = vcombine.high %v1787_v44, %v1787_v44  ;;  %v1393_v59 = vpack.i.b16 %v3831_v20, %v3831_v20  ;;  %v3824_v61 = vcombine.low %v1293_v41, %v1300_v46  ;;  %v3879_v0 = vcombine.low %v1987_v52, %v1987_v52  ;;  %v2189_v41 = vld [vmem:[%s5081_s1 + $0x8] sm:$0x44] }
  0x92   : > { %v1691_v1 = vpack.i.b16 %v1690_v50, %v1690_v50  ;;  %v1698_v8 = vpack.i.b16 %v1697_v53, %v1697_v53  ;;  %v1890_v5 = vshrl.u32 %v3863_v55, 16  ;;  %v1601_v11 = vpack.i.b16 %v3848_v47, %v3848_v47 }
  0x93   : > { %v2090_v12 = vshrl.u32 %v3879_v0, 16  ;;  %v1794_v25 = vpack.i.b16 %v3863_v55, %v3863_v55  ;;  %v3909_v27 = vcombine.low %v2354_v14, %v2354_v14  ;;  %v1801_v28 = vpack.i.b16 %v3864_v56, %v3864_v56 }
  0x94   : > { %411 = vrot.lane.b32.xlu1 %v3749_v58, %s4103_s13  ;;  %v1201_v58 = vrot.slane %v1196_v51, %v4171_v15  ;;  %v1696_v19 = vrot.slane %v1691_v1, %v4259_v57  ;;  %v1703_v22 = vrot.slane %v1698_v8, %v4259_v57  ;;  %v1891_v23 = vpack.i.b16 %v1890_v5, %v1890_v5  ;;  %v2754_v8 = vld [vmem:[%s5081_s1 + $0x10] sm:$0x22] }
  0x95   : > { %409 = vrot.lane.b32.xlu0 %v3748_v60, %s4103_s13  ;;  %v1400_v60 = vpack.i.b16 %v3832_v21, %v3832_v21  ;;  %v1606_v21 = vrot.slane %v1601_v11, %v4259_v57  ;;  %v2091_v29 = vpack.i.b16 %v2090_v12, %v2090_v12  ;;  %v3910_v31 = vcombine.high %v2354_v14, %v2354_v14 }
  0x96   : > { %v1799_v32 = vrot.slane %v1794_v25, %v4174_v16  ;;  %v1806_v33 = vrot.slane %v1801_v28, %v4174_v16  ;;  %v1994_v34 = vpack.i.b16 %v3879_v0, %v3879_v0  ;;  %v3856_v35 = vcombine.low %v1696_v19, %v1703_v22 }
  0x97   : > { %v1896_v36 = vrot.slane %v1891_v23, %v4174_v16  ;;  %v2368_v47 = vpack.i.b16 %v3910_v31, %v3910_v31  ;;  %v3926_v50 = vcombine.high %v2554_v38, %v2554_v38  ;;  %v3895_v51 = vcombine.low %v2189_v41, %v2189_v41 }
  0x98   : > { %484 = vrot.lane.b32.xlu1 %v3756_v63, %s4102_s12  ;;  %v1503_v63 = vrot.slane %v1498_v43, %v4177_v18  ;;  %v3865_v43 = vcombine.low %v1799_v32, %v1806_v33  ;;  %v1999_v44 = vrot.slane %v1994_v34, %v4171_v15  ;;  %v3941_v12 = vcombine.low %v2754_v8, %v2754_v8 }
  0x99   : > { %587 = vrot.lane.b32.xlu0 %v3765_v62, %s5087_s14  ;;  %v1496_v62 = vrot.slane %v1491_v42, %v4177_v18  ;;  %v2361_v42 = vpack.i.b16 %v3909_v27, %v3909_v27  ;;  %v2568_v0 = vpack.i.b16 %v3926_v50, %v3926_v50 }
  0x9a   : > { %v2761_v22 = vpack.i.b16 %v3941_v12, %v3941_v12 }
  0x9b   : > { %v3840_v17 = vcombine.low %v1496_v62, %v1503_v63  ;;  %v2464_v62 = vshrl.u32 %v3910_v31, 16 }
  0x9c   : > { %589 = vrot.lane.b32.xlu1 %v3766_v2, %s5087_s14  ;;  %v3817_v2 = vcombine.low %v1194_v54, %v1201_v58  ;;  %v2366_v54 = vrot.slane %v2361_v42, %v4259_v57 }
  0x9d   : > { %591 = vrot.lane.b32.xlu0 %v3767_v3, %s5087_s14  ;;  %v1398_v3 = vrot.slane %v1393_v59, %v4177_v18 }
  0xa0   : > { %780 = vrot.lane.b32.xlu1 %v3782_v4, %s5087_s14  ;;  %v1405_v4 = vrot.slane %v1400_v60, %v4177_v18  ;;  %v2373_v60 = vrot.slane %v2368_v47, %v4259_v57 }
  0xa1   : > { %782 = vrot.lane.b32.xlu0 %v3783_v6, %s5087_s14  ;;  %v1897_v6 = vshrl.u32 %v3864_v56, 16  ;;  %v2196_v56 = vpack.i.b16 %v3895_v51, %v3895_v51 }
  0xa2   : > { %v3833_v9 = vcombine.low %v1398_v3, %v1405_v4  ;;  %v2664_v4 = vshrl.u32 %v3926_v50, 16  ;;  %v3911_v11 = vcombine.low %v2366_v54, %v2373_v60 }
  0xa3   : > { %v1898_v24 = vpack.i.b16 %v1897_v6, %v1897_v6  ;;  %v2201_v1 = vrot.slane %v2196_v56, %v4177_v18  ;;  %v2465_v6 = vpack.i.b16 %v2464_v62, %v2464_v62 }
  0xa4   : > { %784 = vrot.lane.b32.xlu1 %v3784_v7, %s5087_s14  ;;  %v3880_v7 = vcombine.high %v1987_v52, %v1987_v52  ;;  %v3896_v52 = vcombine.high %v2189_v41, %v2189_v41 }
  0xa5   : > { %963 = vperm.xlu0 %4045, %v960_v10   ;;  %v1594_v10 = vpack.i.b16 %v3847_v40, %v3847_v40  ;;  %v1903_v37 = vrot.slane %v1898_v24, %v4174_v16  ;;  %v2857_v24 = vshrl.u32 %v3941_v12, 16 }
  0xa6   : > { %v2097_v13 = vshrl.u32 %v3880_v7, 16  ;;  %v2001_v40 = vpack.i.b16 %v3880_v7, %v3880_v7  ;;  %v2203_v58 = vpack.i.b16 %v3896_v52, %v3896_v52 }
  0xa7   : > { %v1599_v20 = vrot.slane %v1594_v10, %v4259_v57  ;;  %v3872_v53 = vcombine.low %v1896_v36, %v1903_v37  ;;  %v2470_v10 = vrot.slane %v2465_v6, %v4259_v57  ;;  %v2858_v32 = vpack.i.b16 %v2857_v24, %v2857_v24 }
  0xa8   : > { %1037 = vrot.lane.b32.xlu1 %v3803_v45, %s4105_s10  ;;  %v2098_v30 = vpack.i.b16 %v2097_v13, %v2097_v13  ;;  %v2096_v45 = vrot.slane %v2091_v29, %v4171_v15  ;;  %v2006_v48 = vrot.slane %v2001_v40, %v4171_v15  ;;  %v3942_v13 = vcombine.high %v2754_v8, %v2754_v8  ;;  %v2954_v29 = vld [vmem:[%s5081_s1 + $0x10] sm:$0x44] }
  0xa9   : > { %1207 = vrot.lane.b32.xlu0 %v3817_v2, %s4107_s16  ;;  %v3849_v26 = vcombine.low %v1599_v20, %v1606_v21  ;;  %v2208_v2 = vrot.slane %v2203_v58, %v4177_v18  ;;  %v2665_v20 = vpack.i.b16 %v2664_v4, %v2664_v4  ;;  %v3957_v33 = vcombine.low %v2954_v29, %v2954_v29 }
  0xaa   : > { %v2103_v46 = vrot.slane %v2098_v30, %v4171_v15  ;;  %v3881_v55 = vcombine.low %v1999_v44, %v2006_v48  ;;  %v2768_v23 = vpack.i.b16 %v3942_v13, %v3942_v13  ;;  %v2864_v28 = vshrl.u32 %v3942_v13, 16 }
  0xab   : > { %v3897_v7 = vcombine.low %v2201_v1, %v2208_v2  ;;  %v2766_v30 = vrot.slane %v2761_v22, %v4171_v15  ;;  %v3958_v36 = vcombine.high %v2954_v29, %v2954_v29  ;;  %v2961_v40 = vpack.i.b16 %v3957_v33, %v3957_v33 }
  0xac   : > { %1008 = vrot.lane.b32.xlu1 %v3802_v49, %s4106_s15  ;;  %v3925_v49 = vcombine.low %v2554_v38, %v2554_v38  ;;  %v3888_v59 = vcombine.low %v2096_v45, %v2103_v46  ;;  %v2773_v31 = vrot.slane %v2768_v23, %v4171_v15  ;;  %v2863_v38 = vrot.slane %v2858_v32, %v4171_v15  ;;  %v3154_v45 = vld [vmem:[%s5081_s1 + $0x10] sm:$0x88] }
  0xad   : > { %1411 = vrot.lane.b32.xlu0 %v3833_v9, %s4109_s20  ;;  %v2968_v42 = vpack.i.b16 %v3958_v36, %v3958_v36  ;;  %v3064_v44 = vshrl.u32 %v3958_v36, 16  ;;  %v2966_v46 = vrot.slane %v2961_v40, %v4177_v18  ;;  %v3973_v47 = vcombine.low %v3154_v45, %v3154_v45 }
  0xae   : > { %v2561_v63 = vpack.i.b16 %v3925_v49, %v3925_v49  ;;  %v2657_v3 = vshrl.u32 %v3925_v49, 16  ;;  %v3943_v37 = vcombine.low %v2766_v30, %v2773_v31  ;;  %v3974_v48 = vcombine.high %v3154_v45, %v3154_v45 }
  0xaf   : > { %v2973_v50 = vrot.slane %v2968_v42, %v4177_v18  ;;  %v3065_v52 = vpack.i.b16 %v3064_v44, %v3064_v44  ;;  %v648_v42 = vld [vmem:[%s4198_s11 + $0x4] sm:$0xff] }
  0xb0   : > { %1306 = vrot.lane.b32.xlu1 %v3824_v61, %s4108_s19  ;;  %v2457_v61 = vshrl.u32 %v3909_v27, 16  ;;  %v2566_v14 = vrot.slane %v2561_v63, %v4174_v16  ;;  %v2658_v19 = vpack.i.b16 %v2657_v3, %v2657_v3  ;;  %v2670_v27 = vrot.slane %v2665_v20, %v4174_v16 }
  0xb1   : > { %1612 = vrot.lane.b32.xlu0 %v3849_v26, %s4111_s28  ;;  %v3168_v54 = vpack.i.b16 %v3974_v48, %v3974_v48  ;;  %v3264_v56 = vshrl.u32 %v3974_v48, 16  ;;  %v3959_v58 = vcombine.low %v2966_v46, %v2973_v50  ;;  %v3070_v60 = vrot.slane %v3065_v52, %v4177_v18 }
  0xb2   : > { %v2458_v5 = vpack.i.b16 %v2457_v61, %v2457_v61  ;;  %v2663_v26 = vrot.slane %v2658_v19, %v4174_v16  ;;  %v3354_v61 = vld [vmem:[%s5081_s1 + $0x18] sm:$0x11]  ;;  %v3772_v48 = vcombine.high %v648_v42, %v648_v42 }
  0xb3   : > { %v3173_v63 = vrot.slane %v3168_v54, %v4259_v57  ;;  %v3265_v1 = vpack.i.b16 %v3264_v56, %v3264_v56  ;;  %v3989_v3 = vcombine.low %v3354_v61, %v3354_v61  ;;  %v3990_v4 = vcombine.high %v3354_v61, %v3354_v61  ;;  %v3753_v54 = vld [vmem:[%s5082_s2 + $0x8] sm:$0xf] }
  0xb4   : > { %1509 = vrot.lane.b32.xlu1 %v3840_v17, %s4110_s23  ;;  %v2463_v9 = vrot.slane %v2458_v5, %v4259_v57  ;;  %v2573_v17 = vrot.slane %v2568_v0, %v4174_v16  ;;  %v3934_v34 = vcombine.low %v2663_v26, %v2670_v27 }
  0xb5   : > { %1812 = vrot.lane.b32.xlu0 %v3865_v43, %s4113_s9  ;;  %v3057_v43 = vshrl.u32 %v3957_v33, 16  ;;  %v3361_v6 = vpack.i.b16 %v3989_v3, %v3989_v3 }
  0xb6   : > { %v3918_v21 = vcombine.low %v2463_v9, %v2470_v10  ;;  %v3927_v25 = vcombine.low %v2566_v14, %v2573_v17  ;;  %v3457_v9 = vshrl.u32 %v3989_v3, 16  ;;  %v3464_v10 = vshrl.u32 %v3990_v4, 16 }
  0xb7   : > { %v3058_v51 = vpack.i.b16 %v3057_v43, %v3057_v43  ;;  %v3366_v17 = vrot.slane %v3361_v6, %v4174_v16  ;;  %v3770_v6 = vld [vmem:[%s5082_s2 + $0x10] sm:$0xf] }
  0xb8   : > { %1709 = vrot.lane.b32.xlu1 %v3856_v35, %s4112_s8  ;;  %v2865_v35 = vpack.i.b16 %v2864_v28, %v2864_v28  ;;  %v3465_v20 = vpack.i.b16 %v3464_v10, %v3464_v10 }
  0xb9   : > { %2012 = vrot.lane.b32.xlu0 %v3881_v55, %s4098_s29  ;;  %v3257_v55 = vshrl.u32 %v3973_v47, 16 }
  0xba   : > { %v2870_v41 = vrot.slane %v2865_v35, %v4171_v15  ;;  %v3470_v24 = vrot.slane %v3465_v20, %v4174_v16  ;;  %v3742_v35 = vld [vmem:[%s5082_s2 + $0x4] sm:$0xf]  ;;  %v3788_v20 = vld [vmem:[%s5082_s2 + $0x1c] sm:$0xf] }
  0xbb   : > { %v3258_v0 = vpack.i.b16 %v3257_v55, %v3257_v55 }
  0xbc   : > { %1909 = vrot.lane.b32.xlu1 %v3872_v53, %s4100_s7  ;;  %v3950_v49 = vcombine.low %v2863_v38, %v2870_v41  ;;  %v3161_v53 = vpack.i.b16 %v3973_v47, %v3973_v47  ;;  %v292_v47 = vld [vmem:[%s5082_s2] sm:$0xf] }
  0xbd   : > { %2214 = vrot.lane.b32.xlu0 %v3897_v7, %s4099_s30  ;;  %v3263_v5 = vrot.slane %v3258_v0, %v4259_v57  ;;  %v3368_v7 = vpack.i.b16 %v3990_v4, %v3990_v4  ;;  %v3787_v0 = vld [vmem:[%s4198_s11 + $0x1c] sm:$0xff] }
  0xbe   : > { %v3166_v62 = vrot.slane %v3161_v53, %v4259_v57  ;;  %v3775_v53 = vld [vmem:[%s4198_s11 + $0x10] sm:$0xff] }
  0xbf   : > { %v3373_v19 = vrot.slane %v3368_v7, %v4174_v16  ;;  %v3777_v61 = vcombine.low %v3775_v53, %v3775_v53 }
  0xc0   : > { %2109 = vrot.lane.b32.xlu1 %v3888_v59, %s4114_s24  ;;  %v3063_v59 = vrot.slane %v3058_v51, %v4177_v18  ;;  %v3975_v8 = vcombine.low %v3166_v62, %v3173_v63  ;;  %v3270_v18 = vrot.slane %v3265_v1, %v4259_v57  ;;  %v3458_v57 = vpack.i.b16 %v3457_v9, %v3457_v9 }
  0xc1   : > { %2476 = vrot.lane.b32.xlu0 %v3918_v21, %s4115_s27  ;;  %v3991_v22 = vcombine.low %v3366_v17, %v3373_v19  ;;  %v720_v4 = vsel %vm353_vm4, %v3777_v61, 0  ;;  %v3781_v19 = vld [vmem:[%s5082_s2 + $0x18] sm:$0xf] }
  0xc2   : > { %v3966_v2 = vcombine.low %v3063_v59, %v3070_v60  ;;  %v3982_v12 = vcombine.low %v3263_v5, %v3270_v18  ;;  %v3463_v23 = vrot.slane %v3458_v57, %v4174_v16  ;;  %v3778_v60 = vcombine.high %v3775_v53, %v3775_v53  ;;  %v3793_v5 = vld [vmem:[%s4198_s11 + $0x28] sm:$0xff] }
  0xc3   : > { %v3796_v9 = vcombine.high %v3793_v5, %v3793_v5 }
  0xc4   : > { %2379 = vrot.lane.b32.xlu1 %v3911_v11, %s5087_s14  ;;  %v3554_v11 = vld [vmem:[%s5081_s1 + $0x18] sm:$0x22]  ;;  %v3998_v26 = vcombine.low %v3463_v23, %v3470_v24  ;;  %s5092_s14 = smov 1  }
  0xc5   : > { %v4005_v13 = vcombine.low %v3554_v11, %v3554_v11  ;;  %v4006_v14 = vcombine.high %v3554_v11, %v3554_v11  ;;  %v3789_v11 = vcombine.low %v3787_v0, %v3787_v0 }
  0xc7   : > { %v3561_v21 = vpack.i.b16 %v4005_v13, %v4005_v13  ;;  %v3776_v13 = vld [vmem:[%s5082_s2 + $0x14] sm:$0xf]  ;;  %v852_v17 = vsel %vm353_vm4, %v3789_v11, 0 }
  0xc8   : > { %2579 = vrot.lane.b32.xlu1 %v3927_v25, %s4102_s12  ;;  %v3568_v25 = vpack.i.b16 %v4006_v14, %v4006_v14  ;;  %v3795_v14 = vcombine.low %v3793_v5, %v3793_v5 }
  0xc9   : > { %v3566_v27 = vrot.slane %v3561_v21, %v4171_v15  ;;  %v3794_v21 = vld [vmem:[%s5082_s2 + $0x20] sm:$0xf] }
  0xca   : > { %v3573_v28 = vrot.slane %v3568_v25, %v4171_v15  ;;  %v912_v57 = vsel %vm353_vm4, %v3795_v14, 0 }
  0xcc   : > { %2676 = vrot.lane.b32.xlu1 %v3934_v34, %s4103_s13  ;;  %v4007_v29 = vcombine.low %v3566_v27, %v3573_v28 }
  0xd0   : > { %2779 = vrot.lane.b32.xlu1 %v3943_v37, %s4106_s15 }
  0xd4   : > { %2876 = vrot.lane.b32.xlu1 %v3950_v49, %s4105_s10  ;;  %v3771_v49 = vcombine.low %v648_v42, %v648_v42 }
  0xd6   : > { %v660_v56 = vsel %vm353_vm4, %v3771_v49, 0 }
  0xd8   : > { %2979 = vrot.lane.b32.xlu1 %v3959_v58, %s4107_s16 }
  0xdc   : > { %3076 = vrot.lane.b32.xlu1 %v3966_v2, %s4108_s19  ;;  %v3764_v2 = vld [vmem:[%s5082_s2 + $0xc] sm:$0xf] }
  0xe0   : > { %3179 = vrot.lane.b32.xlu1 %v3975_v8, %s4109_s20  ;;  %v3790_v8 = vcombine.high %v3787_v0, %v3787_v0 }
  0xe4   : > { %3276 = vrot.lane.b32.xlu1 %v3982_v12, %s4110_s23 }
  0xe8   : > { %3379 = vrot.lane.b32.xlu1 %v3991_v22, %s4111_s28 }
  0xec   : > { %3476 = vrot.lane.b32.xlu1 %v3998_v26, %s4112_s8 }
  0xf0   : > { %3579 = vrot.lane.b32.xlu1 %v4007_v29, %s4113_s9 }
  0xfa   : > { %v345_v30 = vpop.permute.xlu1 %344 }
  0xfb   : > { %v343_v31 = vpop.permute.xlu0 %342 }
  0xfc   : > { %v348_v32 = vsel %vm346_vm3, %v343_v31, %v345_v30 }
  0xfd   : > { %3746 = vmatprep.subr.msk.bf16.mxu0 %vm353_vm4, %v348_v32 }
  0xfe   : > { %v341_v16 = vpop.permute.xlu1 %340 }
  0xff   : > { %v414_v33 = vpop.permute.xlu0 %413  ;;  %v347_v34 = vsel %vm346_vm3, %v341_v16, %v343_v31 }
 0x100   : > { %v355_v15 = vsel %vm353_vm4, %v347_v34, 0 }
 0x101   : > { %361 = vmatpush1.bf16.msra.mxu0 %v355_v15 }
 0x102   : > { %v481_v36 = vpop.permute.xlu1 %480 }
 0x103   : > { %v483_v37 = vpop.permute.xlu0 %482 }
 0x104   : > { %3747 = vmatmul.mubr.msk.bf16.vlgmr.msra.gmra.mrb[0].mxu0 %vm346_vm3, %v3742_v35  ;;  %v486_v44 = vsel %vm346_vm3, %v481_v36, %v483_v37 }
 0x105   : > { %529 = vmatprep.mubr.bf16.mxu0 %v4101_v39  ;;  %v492_v52 = vsel %vm353_vm4, %v486_v44, 0 }
 0x106   : > { %v412_v38 = vpop.permute.xlu1 %411 }
 0x107   : > { %v410_v40 = vpop.permute.xlu0 %409  ;;  %v417_v41 = vsel %vm415_vm5, %v412_v38, %v414_v33 }
 0x108   : > { %3751 = vmatprep.subr.msk.bf16.mxu1 %vm353_vm4, %v417_v41  ;;  %v416_v43 = vsel %vm415_vm5, %v410_v40, %v412_v38 }
 0x109   : > { %v422_v45 = vsel %vm353_vm4, %v416_v43, 0  ;;  %v4464_v43 = vld [vmem:[#allocation2 + $0xc] sm:$0xf] }
 0x10a   : > { %v485_v46 = vpop.permute.xlu1 %484  ;;  %428 = vmatpush1.bf16.msra.mxu1 %v422_v45 }
 0x10b   : > { %v487_v50 = vsel %vm346_vm3, %v483_v37, %v485_v46  ;;  %v588_v51 = vpop.permute.xlu0 %587 }
 0x10c   : > { %3757 = vmatprep.subr.msk.bf16.mxu0 %vm353_vm4, %v487_v50 }
 0x10d   : > { %3752 = vmatmul.mubr.msk.bf16.vlgmr.msra.gmra.mrb[0].mxu1 %vm346_vm3, %v292_v47  ;;  %498 = vmatpush1.bf16.msra.mxu0 %v492_v52 }
 0x10e   : > { %v590_v55 = vpop.permute.xlu1 %589  ;;  %637 = vmatprep.mubr.bf16.mxu1 %v4101_v39  ;;  %3773 = vmatprep.subr.msk.bf16.mxu0 %vm353_vm4, %v3772_v48 }
 0x10f   : > { %v594_v58 = vsel %vm5089_vm6, %v588_v51, %v590_v55  ;;  %v592_v59 = vpop.permute.xlu0 %591 }
 0x110   : > { %v595_v62 = vsel %vm5089_vm6, %v590_v55, %v592_v59  ;;  %3758 = vmatmul.mubr.msk.bf16.vlgmr.msra.gmra.mrb[4].mxu0 %vm346_vm3, %v3753_v54  ;;  %v600_v63 = vsel %vm353_vm4, %v594_v58, 0 }
 0x111   : > { %3768 = vmatprep.subr.msk.bf16.mxu1 %vm353_vm4, %v595_v62  ;;  %666 = vmatpush1.bf16.msra.mxu0 %v660_v56 }
 0x112   : > { %v781_v1 = vpop.permute.xlu1 %780  ;;  %606 = vmatpush1.bf16.msra.mxu1 %v600_v63  ;;  %697 = vmatprep.mubr.bf16.mxu0 %v4101_v39 }
 0x113   : > { %v783_v3 = vpop.permute.xlu0 %782  ;;  %3779 = vmatprep.subr.msk.bf16.mxu1 %vm353_vm4, %v3778_v60 }
 0x114   : > { %v786_v18 = vsel %vm5089_vm6, %v781_v1, %v783_v3 }
 0x115   : > { %3769 = vmatmul.mubr.msk.bf16.vlgmr.msra.gmra.mrb[4].mxu1 %vm346_vm3, %v3764_v2  ;;  %v792_v12 = vsel %vm353_vm4, %v786_v18, 0 }
 0x116   : > { %v785_v7 = vpop.permute.xlu1 %784  ;;  %726 = vmatpush1.bf16.msra.mxu1 %v720_v4  ;;  %757 = vmatprep.mubr.bf16.mxu1 %v4101_v39 }
 0x117   : > { %v787_v10 = vsel %vm5089_vm6, %v783_v3, %v785_v7  ;;  %3791 = vmatprep.subr.msk.bf16.mxu1 %vm353_vm4, %v3790_v8 }
 0x118   : > { %3774 = vmatmul.mubr.msk.bf16.vlgmr.msra.gmra.mrb[8].mxu0 %vm346_vm3, %v3770_v6  ;;  %3785 = vmatprep.subr.msk.bf16.mxu0 %vm353_vm4, %v787_v10 }
 0x119   : > { %798 = vmatpush1.bf16.msra.mxu0 %v792_v12  ;;  %829 = vmatprep.mubr.bf16.mxu0 %v4101_v39 }
 0x11a   : > { %3797 = vmatprep.subr.msk.bf16.mxu0 %vm353_vm4, %v3796_v9  ;;  %v4432_v22 = vpop.permute.xlu1 %1037 }
 0x11d   : > { %3780 = vmatmul.mubr.msk.bf16.vlgmr.msra.gmra.mrb[8].mxu1 %vm346_vm3, %v3776_v13 }
 0x11e   : > { %858 = vmatpush1.bf16.msra.mxu1 %v852_v17  ;;  %889 = vmatprep.mubr.bf16.mxu1 %v4101_v39  ;;  %v4434_v23 = vpop.permute.xlu1 %1008 }
 0x120   : > { %3786 = vmatmul.mubr.msk.bf16.vlgmr.msra.gmra.mrb[12].mxu0 %vm346_vm3, %v3781_v19 }
 0x121   : > { %918 = vmatpush1.bf16.msra.mxu0 %v912_v57  ;;  %949 = vmatprep.mubr.bf16.mxu0 %v4101_v39 }
 0x122   : > { %v4436_v24 = vpop.permute.xlu1 %1306 }
 0x124   : > { %v4440_v26 = vpop.permute.xlu0 %963 }
 0x125   : > { %3792 = vmatmul.mubr.msk.bf16.vlgmr.msra.gmra.mrb[12].mxu1 %vm346_vm3, %v3788_v20 }
 0x126   : > { %1106 = vmatprep.mubr.bf16.mxu1 %v4101_v39  ;;  %v4438_v25 = vpop.permute.xlu1 %1509 }
 0x128   : > { %3798 = vmatmul.mubr.msk.bf16.vlgmr.msra.gmra.mrb[16].mxu0 %vm346_vm3, %v3794_v21  ;;  %v4444_v28 = vpop.permute.xlu0 %1207 }
 0x129   : > { %1173 = vmatprep.mubr.bf16.mxu0 %v4101_v39 }
 0x12a   : > { %v4442_v27 = vpop.permute.xlu1 %1709 }
 0x12c   : > { %v4448_v30 = vpop.permute.xlu0 %1411 }
 0x12e   : > { %v4446_v29 = vpop.permute.xlu1 %1909 }
 0x130   : > { %v4452_v16 = vpop.permute.xlu0 %1612 }
 0x132   : > { %v4450_v31 = vpop.permute.xlu1 %2109 }
 0x134   : > { %v4457_v35 = vpop.permute.xlu0 %1812 }
 0x136   : > { %v2380_v32 = vpop.permute.xlu1 %2379 }
 0x137   : > { %v2381_v33 = vrot.slane %v2380_v32, 4 }
 0x138   : > { %v4459_v38 = vpop.permute.xlu0 %2012 }
 0x139   : > { %v4455_v15 = vsel %vm5089_vm6, %v2381_v33, %v2380_v32  ;;  %v2386_v47 = vmul.bf16 %v2381_v33, %v4464_v43  ;;  %vm1129_vm6 = vcmask 596992  }
 0x13a   : > { %v2580_v34 = vpop.permute.xlu1 %2579 }
 0x13b   : > { %v2581_v37 = vrot.slane %v2580_v34, 4  ;;  %v3915_v55 = vcombine.low %v2386_v47, %v2386_v47 }
 0x13c   : > { %v4466_v44 = vpop.permute.xlu0 %2214 }
 0x13d   : > { %v4462_v40 = vsel %vm346_vm3, %v2581_v37, %v2580_v34  ;;  %v2586_v53 = vmul.bf16 %v2581_v37, %v4464_v43  ;;  %2401 = vrot.lane.b32.xlu1 %v3915_v55, %s4099_s30 }
 0x13e   : > { %v2677_v36 = vpop.permute.xlu1 %2676 }
 0x13f   : > { %v2678_v42 = vrot.slane %v2677_v36, 4  ;;  %v3931_v60 = vcombine.low %v2586_v53, %v2586_v53 }
 0x140   : > { %v4472_v49 = vpop.permute.xlu0 %2476 }
 0x141   : > { %v4469_v45 = vsel %vm415_vm5, %v2678_v42, %v2677_v36  ;;  %v2478_v51 = vrot.slane %v4472_v49, 4  ;;  %v2683_v59 = vmul.bf16 %v2678_v42, %v4464_v43  ;;  %2601 = vrot.lane.b32.xlu1 %v3931_v60, %s4098_s29 }
 0x142   : > { %v2780_v41 = vpop.permute.xlu1 %2779 }
 0x143   : > { %v2781_v48 = vrot.slane %v2780_v41, 4  ;;  %v2483_v54 = vmul.bf16 %v2478_v51, %v4464_v43  ;;  %v3938_v3 = vcombine.low %v2683_v59, %v2683_v59 }
 0x145   : > { %v4475_v50 = vsel %vm5091_vm7, %v2781_v48, %v2780_v41  ;;  %v3922_v62 = vcombine.low %v2483_v54, %v2483_v54  ;;  %v2786_v1 = vmul.bf16 %v2781_v48, %v4464_v43 }
 0x146   : > { %v2877_v46 = vpop.permute.xlu1 %2876 }
 0x147   : > { %v2878_v56 = vrot.slane %v2877_v46, 4  ;;  %2498 = vrot.lane.b32.xlu0 %v3922_v62, %s4114_s24  ;;  %v3947_v18 = vcombine.low %v2786_v1, %v2786_v1 }
 0x149   : > { %v4484_v58 = vsel %vm1040_vm8, %v2878_v56, %v2877_v46  ;;  %v2883_v5 = vmul.bf16 %v2878_v56, %v4464_v43  ;;  %2801 = vrot.lane.b32.xlu1 %v3947_v18, %s4113_s9 }
 0x14a   : > { %v2980_v52 = vpop.permute.xlu1 %2979 }
 0x14b   : > { %v2981_v61 = vrot.slane %v2980_v52, 4  ;;  %2698 = vrot.lane.b32.xlu0 %v3938_v3, %s4100_s7  ;;  %v3954_v11 = vcombine.low %v2883_v5, %v2883_v5 }
 0x14d   : > { %v4489_v0 = vsel %vm1210_vm9, %v2981_v61, %v2980_v52  ;;  %v2986_v9 = vmul.bf16 %v2981_v61, %v4464_v43 }
 0x14e   : > { %v3077_v63 = vpop.permute.xlu1 %3076 }
 0x14f   : > { %v3078_v2 = vrot.slane %v3077_v63, 4  ;;  %2898 = vrot.lane.b32.xlu0 %v3954_v11, %s4112_s8  ;;  %v3963_v13 = vcombine.low %v2986_v9, %v2986_v9 }
 0x151   : > { %v4494_v4 = vsel %vm1309_vm10, %v3078_v2, %v3077_v63  ;;  %v3083_v12 = vmul.bf16 %v3078_v2, %v4464_v43  ;;  %3001 = vrot.lane.b32.xlu1 %v3963_v13, %s4111_s28 }
 0x152   : > { %v3180_v8 = vpop.permute.xlu1 %3179 }
 0x153   : > { %v3181_v6 = vrot.slane %v3180_v8, 4  ;;  %v3970_v20 = vcombine.low %v3083_v12, %v3083_v12 }
 0x155   : > { %v4500_v7 = vsel %vm1414_vm11, %v3181_v6, %v3180_v8  ;;  %v3186_v57 = vmul.bf16 %v3181_v6, %v4464_v43  ;;  %3098 = vrot.lane.b32.xlu0 %v3970_v20, %s4110_s23 }
 0x156   : > { %v3277_v10 = vpop.permute.xlu1 %3276 }
 0x157   : > { %v3278_v17 = vrot.slane %v3277_v10, 4  ;;  %v3979_v33 = vcombine.low %v3186_v57, %v3186_v57 }
 0x159   : > { %v4508_v21 = vsel %vm1331_vm12, %v3278_v17, %v3277_v10  ;;  %v3283_v34 = vmul.bf16 %v3278_v17, %v4464_v43  ;;  %3201 = vrot.lane.b32.xlu1 %v3979_v33, %s4109_s20 }
 0x15a   : > { %v3380_v14 = vpop.permute.xlu1 %3379 }
 0x15b   : > { %v3381_v19 = vrot.slane %v3380_v14, 4  ;;  %v3986_v41 = vcombine.low %v3283_v34, %v3283_v34 }
 0x15d   : > { %v4511_v32 = vsel %vm1232_vm13, %v3381_v19, %v3380_v14  ;;  %v3386_v36 = vmul.bf16 %v3381_v19, %v4464_v43  ;;  %3298 = vrot.lane.b32.xlu0 %v3986_v41, %s4108_s19 }
 0x15f   : > { %v3995_v37 = vcombine.low %v3386_v36, %v3386_v36 }
 0x161   : > { %3401 = vrot.lane.b32.xlu1 %v3995_v37, %s4107_s16 }
 0x1d7   : > { %v394_v42 = vpop.f32.mrb[0].mxu0 }
 0x1d8   : > { %v396_v46 = vpop.f32.mrb[1].mxu0 }
 0x1d9   : > { %v398_v47 = vpop.f32.mrb[2].mxu0 }
 0x1da   : > { %v399_v48 = vpop.f32.mrb[3].mxu0 }
 0x1e0   : > { %v461_v52 = vpop.f32.mrb[0].mxu1 }
 0x1e1   : > { %v462_v53 = vadd.f32 %v461_v52, %v394_v42  ;;  %v463_v54 = vpop.f32.mrb[1].mxu1 }
 0x1e2   : > { %v464_v55 = vadd.f32 %v463_v54, %v396_v46  ;;  %v465_v56 = vpop.f32.mrb[2].mxu1 }
 0x1e3   : > { %v466_v59 = vpop.f32.mrb[3].mxu1  ;;  %v531_v60 = vpop.f32.mrb[4].mxu0 }
 0x1e4   : > { %v538_v61 = vadd.f32 %v531_v60, %v462_v53  ;;  %v533_v62 = vpop.f32.mrb[5].mxu0 }
 0x1e5   : > { %v539_v63 = vadd.f32 %v533_v62, %v464_v55  ;;  %v535_v1 = vpop.f32.mrb[6].mxu0 }
 0x1e6   : > { %v536_v2 = vpop.f32.mrb[7].mxu0 }
 0x1e8   : > { %v639_v3 = vpop.f32.mrb[4].mxu1 }
 0x1e9   : > { %v646_v8 = vadd.f32 %v639_v3, %v538_v61  ;;  %v641_v5 = vpop.f32.mrb[5].mxu1 }
 0x1ea   : > { %v647_v18 = vadd.f32 %v641_v5, %v539_v63  ;;  %v643_v6 = vpop.f32.mrb[6].mxu1 }
 0x1eb   : > { %v644_v9 = vpop.f32.mrb[7].mxu1  ;;  %v699_v10 = vpop.f32.mrb[8].mxu0 }
 0x1ec   : > { %v706_v11 = vadd.f32 %v699_v10, %v646_v8  ;;  %v701_v12 = vpop.f32.mrb[9].mxu0  ;;  %v2479_v9 = vsel %vm5090_vm14, %v2478_v51, %v4472_v49  ;;  %vm2112_vm14 = vcmask 990208  }
 0x1ed   : > { %v707_v13 = vadd.f32 %v701_v12, %v647_v18  ;;  %v703_v14 = vpop.f32.mrb[10].mxu0 }
 0x1ee   : > { %v704_v17 = vpop.f32.mrb[11].mxu0 }
 0x1f0   : > { %v759_v19 = vpop.f32.mrb[8].mxu1 }
 0x1f1   : > { %v766_v57 = vadd.f32 %v759_v19, %v706_v11  ;;  %v761_v20 = vpop.f32.mrb[9].mxu1 }
 0x1f2   : > { %v767_v33 = vadd.f32 %v761_v20, %v707_v13  ;;  %v763_v34 = vpop.f32.mrb[10].mxu1 }
 0x1f3   : > { %v764_v36 = vpop.f32.mrb[11].mxu1  ;;  %v831_v37 = vpop.f32.mrb[12].mxu0 }
 0x1f4   : > { %v838_v41 = vadd.f32 %v831_v37, %v766_v57  ;;  %v833_v42 = vpop.f32.mrb[13].mxu0  ;;  %v1209_v57 = vrot.slane %v4444_v28, 4 }
 0x1f5   : > { %v839_v46 = vadd.f32 %v833_v42, %v767_v33  ;;  %v835_v47 = vpop.f32.mrb[14].mxu0 }
 0x1f6   : > { %v836_v48 = vpop.f32.mrb[15].mxu0  ;;  %v1211_v34 = vsel %vm1210_vm9, %v1209_v57, %v4444_v28  ;;  %v1814_v28 = vrot.slane %v4457_v35, 4 }
 0x1f8   : > { %v891_v52 = vpop.f32.mrb[12].mxu1 }
 0x1f9   : > { %v898_v53 = vadd.f32 %v891_v52, %v838_v41  ;;  %v893_v54 = vpop.f32.mrb[13].mxu1  ;;  %v1413_v41 = vrot.slane %v4448_v30, 4 }
 0x1fa   : > { %v899_v55 = vadd.f32 %v893_v54, %v839_v46  ;;  %v895_v56 = vpop.f32.mrb[14].mxu1 }
 0x1fb   : > { %v896_v59 = vpop.f32.mrb[15].mxu1  ;;  %v951_v60 = vpop.f32.mrb[16].mxu0  ;;  %v1415_v54 = vsel %vm1414_vm11, %v1413_v41, %v4448_v30 }
 0x1fc   : > { %v958_v61 = vadd.f32 %v951_v60, %v898_v53  ;;  %v953_v62 = vpop.f32.mrb[17].mxu0  ;;  %v1911_v53 = vrot.slane %v4446_v29, 4 }
 0x1fd   : > { %v959_v63 = vadd.f32 %v953_v62, %v899_v55  ;;  %v955_v1 = vpop.f32.mrb[18].mxu0  ;;  %v2014_v55 = vrot.slane %v4459_v38, 4 }
 0x1fe   : > { %v966_v2 = vadd.f32 %v4440_v26, %v958_v61  ;;  %v956_v3 = vpop.f32.mrb[19].mxu0 }
 0x1ff   : > { %v967_v8 = vadd.f32 %v4440_v26, %v959_v63  ;;  %v2216_v63 = vrot.slane %v4466_v44, 4 }
 0x200   : > { %v4521_v5 = vmax.f32 %v966_v2, 0.0  ;;  %v1614_v2 = vrot.slane %v4452_v16, 4 }
 0x201   : > { %v4523_v18 = vmax.f32 %v967_v8, 0.0 }
 0x203   : > { %v4527_v6 = vpack.c.bf16 %v4523_v18, %v4521_v5 }
 0x205   : > { %980 = vst [vmem:[#allocation2 + $0x4] sm:$0xff] %v4527_v6  ;;  %v4536_v10 = vmul.bf16 %v4527_v6, %v4508_v21  ;;  %v4540_v26 = vmul.bf16 %v4527_v6, %v4511_v32  ;;  %v4544_v11 = vmul.bf16 %v4527_v6, %v4455_v15  ;;  %v4547_v12 = vmul.bf16 %v4527_v6, %v2479_v9 }
 0x206   : > { %v4551_v49 = vmul.bf16 %v4527_v6, %v4462_v40  ;;  %v4555_v51 = vmul.bf16 %v4527_v6, %v4469_v45  ;;  %v1039_v21 = vrot.slane %v4432_v22, 4  ;;  %v1010_v32 = vrot.slane %v4434_v23, 4 }
 0x207   : > { %v4561_v13 = vmul.bf16 %v4527_v6, %v4475_v50  ;;  %v4565_v15 = vmul.bf16 %v4527_v6, %v4484_v58  ;;  %v4569_v40 = vmul.bf16 %v4527_v6, %v4489_v0  ;;  %v4573_v45 = vmul.bf16 %v4527_v6, %v4494_v4 }
 0x208   : > { %v4577_v14 = vmul.bf16 %v4527_v6, %v4500_v7  ;;  %v1041_v50 = vsel %vm1040_vm8, %v1039_v21, %v4432_v22  ;;  %v1012_v0 = vsel %vm5091_vm7, %v1010_v32, %v4434_v23  ;;  %v1308_v22 = vrot.slane %v4436_v24, 4 }
 0x20a   : > { %v1310_v42 = vsel %vm1309_vm10, %v1308_v22, %v4436_v24  ;;  %v1511_v24 = vrot.slane %v4438_v25, 4 }
 0x20c   : > { %v4581_v17 = vld [vmem:[#allocation2] sm:$0xff]  ;;  %v4583_v19 = vld [vmem:[#allocation2 + $0x8] sm:$0xf]  ;;  %v1512_v1 = vsel %vm1331_vm12, %v1511_v24, %v4438_v25  ;;  %v1615_v25 = vsel %vm1232_vm13, %v1614_v2, %v4452_v16  ;;  %v1815_v16 = vsel %vm1129_vm6, %v1814_v28, %v4457_v35  ;;  %v2111_v35 = vrot.slane %v4450_v31, 4 }
 0x20d   : > { %v1044_v58 = vmul.bf16 %v1041_v50, %v4581_v17  ;;  %v1015_v33 = vmul.bf16 %v1012_v0, %v4581_v17  ;;  %v1045_v7 = vmul.bf16 %v1039_v21, %v4583_v19  ;;  %v1214_v23 = vmul.bf16 %v1211_v34, %v4581_v17 }
 0x20e   : > { %v1313_v48 = vmul.bf16 %v1310_v42, %v4581_v17  ;;  %v1016_v52 = vmul.bf16 %v1010_v32, %v4583_v19  ;;  %v1418_v56 = vmul.bf16 %v1415_v54, %v4581_v17  ;;  %v4614_v59 = vmul.bf16 %v1814_v28, %v4583_v19 }
 0x20f   : > { %v3806_v4 = vcombine.high %v1044_v58, %v1044_v58  ;;  %v3805_v20 = vcombine.low %v1044_v58, %v1044_v58  ;;  %v3811_v36 = vcombine.high %v1015_v33, %v1015_v33  ;;  %v3807_v37 = vcombine.low %v1045_v7, %v1045_v7 }
 0x210   : > { %v3820_v46 = vcombine.high %v1214_v23, %v1214_v23  ;;  %v3810_v47 = vcombine.low %v1015_v33, %v1015_v33  ;;  %v3827_v60 = vcombine.high %v1313_v48, %v1313_v48  ;;  %v3812_v61 = vcombine.low %v1016_v52, %v1016_v52 }
 0x211   : > { %1058 = vrot.lane.b32.xlu1 %v3806_v4, %s4112_s8  ;;  %1056 = vrot.lane.b32.xlu0 %v3805_v20, %s4112_s8  ;;  %v4617_v62 = vmul.bf16 %v1911_v53, %v4583_v19  ;;  %v4620_v30 = vmul.bf16 %v2014_v55, %v4583_v19  ;;  %v4629_v3 = vmul.bf16 %v2216_v63, %v4583_v19  ;;  %v1711_v50 = vrot.slane %v4442_v27, 4 }
 0x212   : > { %v3836_v8 = vcombine.high %v1418_v56, %v1418_v56  ;;  %v3819_v9 = vcombine.low %v1214_v23, %v1214_v23  ;;  %v1515_v21 = vmul.bf16 %v1512_v1, %v4581_v17  ;;  %v1215_v32 = vmul.bf16 %v1209_v57, %v4583_v19 }
 0x213   : > { %v1618_v4 = vmul.bf16 %v1615_v25, %v4581_v17  ;;  %v1712_v57 = vsel %vm1062_vm15, %v1711_v50, %v4442_v27  ;;  %v3826_v33 = vcombine.low %v1313_v48, %v1313_v48  ;;  %v1314_v34 = vmul.bf16 %v1308_v22, %v4583_v19 }
 0x214   : > { %v3843_v58 = vcombine.high %v1515_v21, %v1515_v21  ;;  %v3821_v0 = vcombine.low %v1215_v32, %v1215_v32  ;;  %v1715_v7 = vmul.bf16 %v1712_v57, %v4581_v17  ;;  %v1818_v23 = vmul.bf16 %v1815_v16, %v4581_v17 }
 0x215   : > { %1125 = vrot.lane.b32.xlu1 %v3811_v36, %s4113_s9  ;;  %1060 = vrot.lane.b32.xlu0 %v3807_v37, %s4112_s8  ;;  %v3852_v20 = vcombine.high %v1618_v4, %v1618_v4  ;;  %v3828_v37 = vcombine.low %v1314_v34, %v1314_v34  ;;  %v1912_v27 = vsel %vm286_vm1, %v1911_v53, %v4446_v29 }
 0x216   : > { %v3859_v36 = vcombine.high %v1715_v7, %v1715_v7  ;;  %v3868_v42 = vcombine.high %v1818_v23, %v1818_v23  ;;  %v3835_v22 = vcombine.low %v1418_v56, %v1418_v56  ;;  %v2015_v48 = vsel %vm324_vm0, %v2014_v55, %v4459_v38 }
 0x217   : > { %v2018_v29 = vmul.bf16 %v2015_v48, %v4581_v17  ;;  %v3842_v54 = vcombine.low %v1515_v21, %v1515_v21  ;;  %v3913_v25 = vcombine.low %v4544_v11, %v4544_v11  ;;  %v3945_v57 = vcombine.low %v4561_v13, %v4561_v13 }
 0x218   : > { %v3961_v34 = vcombine.low %v4569_v40, %v4569_v40 }
 0x219   : > { %1228 = vrot.lane.b32.xlu1 %v3820_v46, %s4111_s28  ;;  %1123 = vrot.lane.b32.xlu0 %v3810_v47, %s4113_s9  ;;  %v1915_v46 = vmul.bf16 %v1912_v27, %v4581_v17  ;;  %v1419_v47 = vmul.bf16 %v1413_v41, %v4583_v19  ;;  %v2113_v41 = vsel %vm2112_vm14, %v2111_v35, %v4450_v31 }
 0x21a   : > { %v3884_v53 = vcombine.high %v2018_v29, %v2018_v29  ;;  %v2116_v56 = vmul.bf16 %v2113_v41, %v4581_v17  ;;  %v2217_v31 = vsel %vm571_vm2, %v2216_v63, %v4466_v44  ;;  %v3858_v44 = vcombine.low %v1715_v7, %v1715_v7 }
 0x21b   : > { %v3875_v52 = vcombine.high %v1915_v46, %v1915_v46  ;;  %v3837_v28 = vcombine.low %v1419_v47, %v1419_v47  ;;  %v1716_v63 = vmul.bf16 %v1711_v50, %v4583_v19  ;;  %v3937_v50 = vcombine.high %v4555_v51, %v4555_v51 }
 0x21c   : > { %v3890_v38 = vcombine.low %v2116_v56, %v2116_v56  ;;  %v3883_v7 = vcombine.low %v2018_v29, %v2018_v29  ;;  %v3977_v27 = vcombine.low %v4577_v14, %v4577_v14 }
 0x21d   : > { %1327 = vrot.lane.b32.xlu1 %v3827_v60, %s4110_s23  ;;  %1127 = vrot.lane.b32.xlu0 %v3812_v61, %s4113_s9  ;;  %v1516_v60 = vmul.bf16 %v1511_v24, %v4583_v19  ;;  %v2117_v61 = vmul.bf16 %v2111_v35, %v4583_v19  ;;  %v1619_v24 = vmul.bf16 %v1614_v2, %v4583_v19 }
 0x21e   : > { %v3921_v2 = vcombine.high %v4547_v12, %v4547_v12  ;;  %v3869_v19 = vcombine.low %v4614_v59, %v4614_v59  ;;  %v3953_v59 = vcombine.high %v4565_v15, %v4565_v15 }
 0x21f   : > { %v3844_v55 = vcombine.low %v1516_v60, %v1516_v60  ;;  %v3892_v1 = vcombine.low %v2117_v61, %v2117_v61  ;;  %v3853_v32 = vcombine.low %v1619_v24, %v1619_v24 }
 0x221   : > { %1432 = vrot.lane.b32.xlu1 %v3836_v8, %s4109_s20  ;;  %1226 = vrot.lane.b32.xlu0 %v3819_v9, %s4111_s28  ;;  %v3851_v8 = vcombine.low %v1618_v4, %v1618_v4  ;;  %v2220_v9 = vmul.bf16 %v2217_v31, %v4581_v17  ;;  %v3860_v17 = vcombine.low %v1716_v63, %v1716_v63 }
 0x222   : > { %v3874_v4 = vcombine.low %v1915_v46, %v1915_v46  ;;  %v4730_v46 = vpop.permute.xlu0 %2498  ;;  %v3936_v63 = vcombine.low %v4555_v51, %v4555_v51  ;;  %v3804_v51 = vld [vmem:[%s5084_s4 + $0x4] sm:$0xf] }
 0x223   : > { %v3900_v21 = vcombine.high %v2220_v9, %v2220_v9  ;;  %v3899_v47 = vcombine.low %v2220_v9, %v2220_v9 }
 0x225   : > { %1529 = vrot.lane.b32.xlu1 %v3843_v58, %s4108_s19  ;;  %1230 = vrot.lane.b32.xlu0 %v3821_v0, %s4111_s28  ;;  %v3867_v58 = vcombine.low %v1818_v23, %v1818_v23  ;;  %v3929_v0 = vcombine.low %v4551_v49, %v4551_v49  ;;  %v3891_v23 = vcombine.high %v2116_v56, %v2116_v56 }
 0x226   : > { %v4746_v56 = vpop.permute.xlu0 %2698 }
 0x229   : > { %1632 = vrot.lane.b32.xlu1 %v3852_v20, %s4107_s16  ;;  %1325 = vrot.lane.b32.xlu0 %v3826_v33, %s4110_s23  ;;  %v3477_v20 = vpop.permute.xlu1 %3476  ;;  %v3876_v33 = vcombine.low %v4617_v62, %v4617_v62  ;;  %v3969_v62 = vcombine.high %v4573_v45, %v4573_v45 }
 0x22d   : > { %1729 = vrot.lane.b32.xlu1 %v3859_v36, %s4105_s10  ;;  %1329 = vrot.lane.b32.xlu0 %v3828_v37, %s4110_s23  ;;  %v3580_v16 = vpop.permute.xlu1 %3579  ;;  %v3885_v36 = vcombine.low %v4620_v30, %v4620_v30  ;;  %v3985_v30 = vcombine.high %v4536_v10, %v4536_v10 }
 0x22e   : > { %v3581_v48 = vrot.slane %v3580_v16, 4 }
 0x230   : > { %v3586_v31 = vmul.bf16 %v3581_v48, %v4464_v43 }
 0x231   : > { %1832 = vrot.lane.b32.xlu1 %v3868_v42, %s4106_s15  ;;  %1430 = vrot.lane.b32.xlu0 %v3835_v22, %s4109_s20  ;;  %v4718_v37 = vpop.permute.xlu1 %2401  ;;  %v3478_v42 = vrot.slane %v3477_v20, 4 }
 0x233   : > { %v3479_v35 = vsel %vm1062_vm15, %v3478_v42, %v3477_v20 }
 0x234   : > { %v4739_v29 = vmul.bf16 %v4527_v6, %v3479_v35 }
 0x235   : > { %1929 = vrot.lane.b32.xlu1 %v3875_v52, %s4103_s13  ;;  %1434 = vrot.lane.b32.xlu0 %v3837_v28, %s4109_s20  ;;  %v4728_v22 = vpop.permute.xlu1 %2601  ;;  %v3483_v52 = vmul.bf16 %v3478_v42, %v4464_v43  ;;  %v3993_v28 = vcombine.low %v4540_v26, %v4540_v26  ;;  %v3920_v43 = vcombine.low %v4547_v12, %v4547_v12 }
 0x237   : > { %v4002_v60 = vcombine.low %v3483_v52, %v3483_v52  ;;  %v3994_v52 = vcombine.high %v4540_v26, %v4540_v26 }
 0x239   : > { %2032 = vrot.lane.b32.xlu1 %v3884_v53, %s4102_s12  ;;  %1527 = vrot.lane.b32.xlu0 %v3842_v54, %s4108_s19  ;;  %v4741_v41 = vpop.permute.xlu1 %2801  ;;  %v3901_v53 = vcombine.low %v4629_v3, %v4629_v3  ;;  %v3582_v54 = vsel %vm1129_vm6, %v3581_v48, %v3580_v16  ;;  %v4758_v3 = vpop.permute.xlu0 %2898 }
 0x23d   : > { %2128 = vrot.lane.b32.xlu1 %v3890_v38, %s4115_s27  ;;  %1531 = vrot.lane.b32.xlu0 %v3844_v55, %s4108_s19  ;;  %v4001_v38 = vcombine.high %v4739_v29, %v4739_v29  ;;  %v4753_v55 = vmul.bf16 %v4527_v6, %v3582_v54  ;;  %v4755_v61 = vpop.permute.xlu1 %3001  ;;  %v4011_v6 = vcombine.low %v3586_v31, %v3586_v31  ;;  %v4768_v24 = vpop.permute.xlu0 %3098 }
 0x241   : > { %2132 = vrot.lane.b32.xlu1 %v3892_v1, %s4115_s27  ;;  %1630 = vrot.lane.b32.xlu0 %v3851_v8, %s4107_s16  ;;  %v4009_v1 = vcombine.low %v4753_v55, %v4753_v55  ;;  %v3914_v8 = vcombine.high %v4544_v11, %v4544_v11  ;;  %v4766_v9 = vpop.permute.xlu1 %3201  ;;  %v3930_v11 = vcombine.high %v4551_v49, %v4551_v49 }
 0x245   : > { %2234 = vrot.lane.b32.xlu1 %v3900_v21, %s5092_s14  ;;  %1634 = vrot.lane.b32.xlu0 %v3853_v32, %s4107_s16  ;;  %v4775_v21 = vpop.permute.xlu1 %3401  ;;  %v4777_v32 = vpop.permute.xlu0 %3298 }
 0x249   : > { %2397 = vrot.lane.b32.xlu1 %v3913_v25, %s4099_s30  ;;  %1727 = vrot.lane.b32.xlu0 %v3858_v44, %s4105_s10 }
 0x24d   : > { %1731 = vrot.lane.b32.xlu0 %v3860_v17, %s4105_s10  ;;  %2496 = vrot.lane.b32.xlu1 %v3921_v2, %s4114_s24 }
 0x251   : > { %1830 = vrot.lane.b32.xlu0 %v3867_v58, %s4106_s15  ;;  %2597 = vrot.lane.b32.xlu1 %v3929_v0, %s4098_s29  ;;  %v3946_v58 = vcombine.high %v4561_v13, %v4561_v13 }
 0x255   : > { %1834 = vrot.lane.b32.xlu0 %v3869_v19, %s4106_s15  ;;  %2696 = vrot.lane.b32.xlu1 %v3937_v50, %s4100_s7 }
 0x259   : > { %1927 = vrot.lane.b32.xlu0 %v3874_v4, %s4103_s13  ;;  %2797 = vrot.lane.b32.xlu1 %v3945_v57, %s4113_s9  ;;  %v3952_v4 = vcombine.low %v4565_v15, %v4565_v15  ;;  %v1017_v15 = vld [vmem:[%s5084_s4] sm:$0xf] }
 0x25d   : > { %1931 = vrot.lane.b32.xlu0 %v3876_v33, %s4103_s13  ;;  %2896 = vrot.lane.b32.xlu1 %v3953_v59, %s4112_s8  ;;  %v3962_v33 = vcombine.high %v4569_v40, %v4569_v40 }
 0x261   : > { %2030 = vrot.lane.b32.xlu0 %v3883_v7, %s4102_s12  ;;  %2997 = vrot.lane.b32.xlu1 %v3961_v34, %s4111_s28 }
 0x265   : > { %2034 = vrot.lane.b32.xlu0 %v3885_v36, %s4102_s12  ;;  %3096 = vrot.lane.b32.xlu1 %v3969_v62, %s4110_s23  ;;  %v3968_v36 = vcombine.low %v4573_v45, %v4573_v45  ;;  %v3818_v45 = vld [vmem:[%s5084_s4 + $0x8] sm:$0xf] }
 0x269   : > { %2130 = vrot.lane.b32.xlu0 %v3891_v23, %s4115_s27  ;;  %3197 = vrot.lane.b32.xlu1 %v3977_v27, %s4109_s20  ;;  %v3978_v27 = vcombine.high %v4577_v14, %v4577_v14 }
 0x26d   : > { %2232 = vrot.lane.b32.xlu0 %v3899_v47, %s5092_s14  ;;  %3296 = vrot.lane.b32.xlu1 %v3985_v30, %s4108_s19  ;;  %v3984_v47 = vcombine.low %v4536_v10, %v4536_v10  ;;  %v3825_v10 = vld [vmem:[%s5084_s4 + $0xc] sm:$0xf] }
 0x271   : > { %2236 = vrot.lane.b32.xlu0 %v3901_v53, %s5092_s14  ;;  %3397 = vrot.lane.b32.xlu1 %v3993_v28, %s4107_s16 }
 0x275   : > { %3498 = vrot.lane.b32.xlu0 %v4002_v60, %s4105_s10  ;;  %3496 = vrot.lane.b32.xlu1 %v4001_v38, %s4105_s10  ;;  %v4000_v60 = vcombine.low %v4739_v29, %v4739_v29  ;;  %v3657_v29 = vld [vmem:[%s5085_s5] sm:$0xff] }
 0x279   : > { %2399 = vrot.lane.b32.xlu0 %v3914_v8, %s4099_s30  ;;  %3597 = vrot.lane.b32.xlu1 %v4009_v1, %s4106_s15  ;;  %v4010_v1 = vcombine.high %v4753_v55, %v4753_v55 }
 0x27d   : > { %2494 = vrot.lane.b32.xlu0 %v3920_v43, %s4114_s24  ;;  %3601 = vrot.lane.b32.xlu1 %v4011_v6, %s4106_s15 }
 0x281   : > { %2599 = vrot.lane.b32.xlu0 %v3930_v11, %s4098_s29 }
 0x283   : > { %v1059_v25 = vpop.permute.xlu1 %1058  ;;  %v1057_v44 = vpop.permute.xlu0 %1056 }
 0x284   : > { %v1063_v12 = vsel %vm1062_vm15, %v1057_v44, %v1059_v25 }
 0x285   : > { %2694 = vrot.lane.b32.xlu0 %v3936_v63, %s4100_s7  ;;  %v1069_v49 = vsel %vm353_vm4, %v1063_v12, 0 }
 0x287   : > { %v1126_v17 = vpop.permute.xlu1 %1125  ;;  %v1061_v2 = vpop.permute.xlu0 %1060 }
 0x288   : > { %v1064_v0 = vsel %vm1062_vm15, %v1059_v25, %v1061_v2  ;;  %v3834_v25 = vld [vmem:[%s5084_s4 + $0x10] sm:$0xf] }
 0x289   : > { %3808 = vmatprep.subr.msk.bf16.mxu1 %vm353_vm4, %v1064_v0  ;;  %2799 = vrot.lane.b32.xlu0 %v3946_v58, %s4113_s9  ;;  %v3841_v58 = vld [vmem:[%s5084_s4 + $0x14] sm:$0xf] }
 0x28a   : > { %1075 = vmatpush1.bf16.msra.mxu1 %v1069_v49 }
 0x28b   : > { %v1229_v19 = vpop.permute.xlu1 %1228  ;;  %v1124_v50 = vpop.permute.xlu0 %1123 }
 0x28c   : > { %v1130_v13 = vsel %vm1129_vm6, %v1124_v50, %v1126_v17 }
 0x28d   : > { %2894 = vrot.lane.b32.xlu0 %v3952_v4, %s4112_s8  ;;  %3809 = vmatmul.mubr.msk.bf16.vlgmr.msra.gmra.mrb[16].mxu1 %vm346_vm3, %v3804_v51  ;;  %v1136_v7 = vsel %vm353_vm4, %v1130_v13, 0  ;;  %v3850_v13 = vld [vmem:[%s5084_s4 + $0x18] sm:$0xf] }
 0x28e   : > { %1276 = vmatprep.mubr.bf16.mxu1 %v4101_v39 }
 0x28f   : > { %v1328_v57 = vpop.permute.xlu1 %1327  ;;  %v1128_v20 = vpop.permute.xlu0 %1127 }
 0x290   : > { %v1131_v59 = vsel %vm1129_vm6, %v1126_v17, %v1128_v20 }
 0x291   : > { %3813 = vmatprep.subr.msk.bf16.mxu0 %vm353_vm4, %v1131_v59  ;;  %2999 = vrot.lane.b32.xlu0 %v3962_v33, %s4111_s28 }
 0x292   : > { %1142 = vmatpush1.bf16.msra.mxu0 %v1136_v7 }
 0x293   : > { %v1433_v34 = vpop.permute.xlu1 %1432  ;;  %v1227_v16 = vpop.permute.xlu0 %1226 }
 0x294   : > { %v1233_v40 = vsel %vm1232_vm13, %v1227_v16, %v1229_v19  ;;  %v3857_v16 = vld [vmem:[%s5084_s4 + $0x1c] sm:$0xf] }
 0x295   : > { %3094 = vrot.lane.b32.xlu0 %v3968_v36, %s4110_s23  ;;  %3814 = vmatmul.mubr.msk.bf16.vlgmr.msra.gmra.mrb[20].mxu0 %vm346_vm3, %v1017_v15  ;;  %v1239_v30 = vsel %vm353_vm4, %v1233_v40, 0 }
 0x296   : > { %1375 = vmatprep.mubr.bf16.mxu0 %v4101_v39 }
 0x297   : > { %v1530_v62 = vpop.permute.xlu1 %1529  ;;  %v1231_v23 = vpop.permute.xlu0 %1230 }
 0x298   : > { %v1234_v42 = vsel %vm1232_vm13, %v1229_v19, %v1231_v23 }
 0x299   : > { %3822 = vmatprep.subr.msk.bf16.mxu1 %vm353_vm4, %v1234_v42  ;;  %3199 = vrot.lane.b32.xlu0 %v3978_v27, %s4109_s20 }
 0x29a   : > { %1245 = vmatpush1.bf16.msra.mxu1 %v1239_v30  ;;  %v3866_v30 = vld [vmem:[%s5084_s4 + $0x20] sm:$0xf] }
 0x29b   : > { %v1326_v35 = vpop.permute.xlu0 %1325  ;;  %v1633_v48 = vpop.permute.xlu1 %1632 }
 0x29c   : > { %v1332_v14 = vsel %vm1331_vm12, %v1326_v35, %v1328_v57 }
 0x29d   : > { %3294 = vrot.lane.b32.xlu0 %v3984_v47, %s4108_s19  ;;  %3823 = vmatmul.mubr.msk.bf16.vlgmr.msra.gmra.mrb[20].mxu1 %vm346_vm3, %v3818_v45  ;;  %v1338_v54 = vsel %vm353_vm4, %v1332_v14, 0 }
 0x29e   : > { %1479 = vmatprep.mubr.bf16.mxu1 %v4101_v39 }
 0x29f   : > { %v1330_v28 = vpop.permute.xlu0 %1329  ;;  %v1730_v38 = vpop.permute.xlu1 %1729 }
 0x2a0   : > { %v1333_v53 = vsel %vm1331_vm12, %v1328_v57, %v1330_v28  ;;  %v3873_v28 = vld [vmem:[%s5084_s4 + $0x24] sm:$0xf] }
 0x2a1   : > { %3829 = vmatprep.subr.msk.bf16.mxu0 %vm353_vm4, %v1333_v53  ;;  %3399 = vrot.lane.b32.xlu0 %v3994_v52, %s4107_s16 }
 0x2a2   : > { %1344 = vmatpush1.bf16.msra.mxu0 %v1338_v54 }
 0x2a3   : > { %v1431_v31 = vpop.permute.xlu0 %1430  ;;  %v1833_v43 = vpop.permute.xlu1 %1832 }
 0x2a4   : > { %v1436_v26 = vsel %vm1414_vm11, %v1431_v31, %v1433_v34 }
 0x2a5   : > { %3494 = vrot.lane.b32.xlu0 %v4000_v60, %s4105_s10  ;;  %3830 = vmatmul.mubr.msk.bf16.vlgmr.msra.gmra.mrb[24].mxu0 %vm346_vm3, %v3825_v10  ;;  %v1442_v11 = vsel %vm353_vm4, %v1436_v26, 0 }
 0x2a6   : > { %1576 = vmatprep.mubr.bf16.mxu0 %v4101_v39 }
 0x2a7   : > { %v1435_v8 = vpop.permute.xlu0 %1434  ;;  %v1930_v63 = vpop.permute.xlu1 %1929 }
 0x2a8   : > { %v1437_v6 = vsel %vm1414_vm11, %v1433_v34, %v1435_v8 }
 0x2a9   : > { %3838 = vmatprep.subr.msk.bf16.mxu1 %vm353_vm4, %v1437_v6  ;;  %3599 = vrot.lane.b32.xlu0 %v4010_v1, %s4106_s15  ;;  %v3882_v1 = vld [vmem:[%s5084_s4 + $0x28] sm:$0xf]  ;;  %s4016_s15 = sshll.u32 %s5100_s22, 4 }
 0x2aa   : > { %1448 = vmatpush1.bf16.msra.mxu1 %v1442_v11  ;;  %s251_s27 = scalar_lea.vmem %s5086_s6, %s4016_s15 }
 0x2ab   : > { %v1528_v55 = vpop.permute.xlu0 %1527  ;;  %v2033_v49 = vpop.permute.xlu1 %2032 }
 0x2ac   : > { %v1533_v44 = vsel %vm1309_vm10, %v1528_v55, %v1530_v62  ;;  %v3889_v55 = vld [vmem:[%s5084_s4 + $0x2c] sm:$0xf] }
 0x2ad   : > { %3660 = vperm.xlu0 %4045, %v3657_v29   ;;  %3839 = vmatmul.mubr.msk.bf16.vlgmr.msra.gmra.mrb[24].mxu1 %vm346_vm3, %v3834_v25  ;;  %v1539_v2 = vsel %vm353_vm4, %v1533_v44, 0  ;;  %v4088_v29 = vpack.c.bf16 %v4523_v18, %v4523_v18  ;;  %v4089_v25 = vpack.c.bf16 %v4521_v5, %v4521_v5 }
 0x2ae   : > { %1679 = vmatprep.mubr.bf16.mxu1 %v4101_v39 }
 0x2af   : > { %v1532_v12 = vpop.permute.xlu0 %1531  ;;  %v2129_v57 = vpop.permute.xlu1 %2128 }
 0x2b0   : > { %v1534_v17 = vsel %vm1309_vm10, %v1530_v62, %v1532_v12  ;;  %v2304_v12 = vsel %vm353_vm4, %v4089_v25, 0 }
 0x2b1   : > { %3845 = vmatprep.subr.msk.bf16.mxu0 %vm353_vm4, %v1534_v17 }
 0x2b2   : > { %1545 = vmatpush1.bf16.msra.mxu0 %v1539_v2 }
 0x2b3   : > { %v1631_v0 = vpop.permute.xlu0 %1630  ;;  %v2133_v15 = vpop.permute.xlu1 %2132 }
 0x2b4   : > { %v1636_v51 = vsel %vm1210_vm9, %v1631_v0, %v1633_v48 }
 0x2b5   : > { %3846 = vmatmul.mubr.msk.bf16.vlgmr.msra.gmra.mrb[28].mxu0 %vm346_vm3, %v3841_v58  ;;  %v1642_v4 = vsel %vm353_vm4, %v1636_v51, 0 }
 0x2b6   : > { %1776 = vmatprep.mubr.bf16.mxu0 %v4101_v39 }
 0x2b7   : > { %v1635_v19 = vpop.permute.xlu0 %1634  ;;  %v2235_v62 = vpop.permute.xlu1 %2234 }
 0x2b8   : > { %v1637_v50 = vsel %vm1210_vm9, %v1633_v48, %v1635_v19 }
 0x2b9   : > { %3854 = vmatprep.subr.msk.bf16.mxu1 %vm353_vm4, %v1637_v50 }
 0x2ba   : > { %1648 = vmatpush1.bf16.msra.mxu1 %v1642_v4 }
 0x2bb   : > { %v1728_v20 = vpop.permute.xlu0 %1727  ;;  %v2398_v47 = vpop.permute.xlu1 %2397 }
 0x2bc   : > { %v1733_v33 = vsel %vm1040_vm8, %v1728_v20, %v1730_v38  ;;  %v3912_v20 = vld [vmem:[%s5084_s4 + $0x38] sm:$0xf] }
 0x2bd   : > { %3855 = vmatmul.mubr.msk.bf16.vlgmr.msra.gmra.mrb[28].mxu1 %vm346_vm3, %v3850_v13  ;;  %v1739_v34 = vsel %vm353_vm4, %v1733_v33, 0 }
 0x2be   : > { %1879 = vmatprep.mubr.bf16.mxu1 %v4101_v39 }
 0x2bf   : > { %v1732_v59 = vpop.permute.xlu0 %1731  ;;  %v2497_v53 = vpop.permute.xlu1 %2496 }
 0x2c0   : > { %v1734_v7 = vsel %vm1040_vm8, %v1730_v38, %v1732_v59  ;;  %v2501_v18 = vsel %vm2112_vm14, %v2497_v53, %v4730_v46  ;;  %v3898_v46 = vld [vmem:[%s5084_s4 + $0x30] sm:$0xf] }
 0x2c1   : > { %3861 = vmatprep.subr.msk.bf16.mxu0 %vm353_vm4, %v1734_v7 }
 0x2c2   : > { %1745 = vmatpush1.bf16.msra.mxu0 %v1739_v34  ;;  %v3919_v34 = vld [vmem:[%s5084_s4 + $0x3c] sm:$0xf] }
 0x2c3   : > { %v1831_v36 = vpop.permute.xlu0 %1830  ;;  %v2598_v31 = vpop.permute.xlu1 %2597 }
 0x2c4   : > { %v1836_v40 = vsel %vm5091_vm7, %v1831_v36, %v1833_v43 }
 0x2c5   : > { %3862 = vmatmul.mubr.msk.bf16.vlgmr.msra.gmra.mrb[32].mxu0 %vm346_vm3, %v3857_v16  ;;  %v1842_v42 = vsel %vm353_vm4, %v1836_v40, 0 }
 0x2c6   : > { %1976 = vmatprep.mubr.bf16.mxu0 %v4101_v39 }
 0x2c7   : > { %v1835_v23 = vpop.permute.xlu0 %1834  ;;  %v2697_v44 = vpop.permute.xlu1 %2696 }
 0x2c8   : > { %v1837_v27 = vsel %vm5091_vm7, %v1833_v43, %v1835_v23 }
 0x2c9   : > { %3870 = vmatprep.subr.msk.bf16.mxu1 %vm353_vm4, %v1837_v27 }
 0x2ca   : > { %1848 = vmatpush1.bf16.msra.mxu1 %v1842_v42 }
 0x2cb   : > { %v1928_v45 = vpop.permute.xlu0 %1927  ;;  %v2798_v58 = vpop.permute.xlu1 %2797 }
 0x2cc   : > { %v1933_v35 = vsel %vm415_vm5, %v1928_v45, %v1930_v63  ;;  %v3935_v45 = vld [vmem:[%s5084_s4 + $0x44] sm:$0xf] }
 0x2cd   : > { %3871 = vmatmul.mubr.msk.bf16.vlgmr.msra.gmra.mrb[32].mxu1 %vm346_vm3, %v3866_v30  ;;  %v1939_v52 = vsel %vm353_vm4, %v1933_v35, 0 }
 0x2ce   : > { %2079 = vmatprep.mubr.bf16.mxu1 %v4101_v39 }
 0x2cf   : > { %v1932_v48 = vpop.permute.xlu0 %1931  ;;  %v2897_v19 = vpop.permute.xlu1 %2896 }
 0x2d0   : > { %v1934_v14 = vsel %vm415_vm5, %v1930_v63, %v1932_v48  ;;  %vm5093_vm5 = vcmask 56320  }
 0x2d1   : > { %3877 = vmatprep.subr.msk.bf16.mxu0 %vm353_vm4, %v1934_v14  ;;  %vm5094_vm7 = vmmov %vm5093_vm5 }
 0x2d2   : > { %1945 = vmatpush1.bf16.msra.mxu0 %v1939_v52 }
 0x2d3   : > { %v2031_v54 = vpop.permute.xlu0 %2030  ;;  %v2998_v7 = vpop.permute.xlu1 %2997 }
 0x2d4   : > { %v2036_v10 = vsel %vm346_vm3, %v2031_v54, %v2033_v49 }
 0x2d5   : > { %3878 = vmatmul.mubr.msk.bf16.vlgmr.msra.gmra.mrb[36].mxu0 %vm346_vm3, %v3873_v28  ;;  %v2042_v26 = vsel %vm353_vm4, %v2036_v10, 0  ;;  %v3951_v10 = vld [vmem:[%s5084_s4 + $0x4c] sm:$0xf] }
 0x2d6   : > { %2178 = vmatprep.mubr.bf16.mxu0 %v4101_v39 }
 0x2d7   : > { %v2035_v60 = vpop.permute.xlu0 %2034  ;;  %v3097_v23 = vpop.permute.xlu1 %3096 }
 0x2d8   : > { %v2037_v38 = vsel %vm346_vm3, %v2033_v49, %v2035_v60  ;;  %v3904_v49 = vld [vmem:[%s5084_s4 + $0x34] sm:$0xf] }
 0x2d9   : > { %3886 = vmatprep.subr.msk.bf16.mxu1 %vm353_vm4, %v2037_v38 }
 0x2da   : > { %2048 = vmatpush1.bf16.msra.mxu1 %v2042_v26 }
 0x2db   : > { %v2131_v8 = vpop.permute.xlu0 %2130  ;;  %v3198_v14 = vpop.permute.xlu1 %3197 }
 0x2dc   : > { %v2135_v6 = vsel %vm5093_vm5, %v2129_v57, %v2131_v8  ;;  %v2136_v43 = vsel %vm5094_vm7, %v2131_v8, %v2133_v15  ;;  %vm5095_vm7 = vcmask 7168  }
 0x2dd   : > { %v2141_v11 = vsel %vm353_vm4, %v2135_v6, 0  ;;  %3887 = vmatmul.mubr.msk.bf16.vlgmr.msra.gmra.mrb[36].mxu1 %vm346_vm3, %v3882_v1  ;;  %3893 = vmatprep.subr.msk.bf16.mxu0 %vm353_vm4, %v2136_v43  ;;  %vm5096_vm5 = vmmov %vm5095_vm7 }
 0x2de   : > { %2147 = vmatpush1.bf16.msra.mxu0 %v2141_v11  ;;  %2281 = vmatprep.mubr.bf16.mxu1 %v4101_v39 }
 0x2df   : > { %3907 = vmatprep.subr.msk.bf16.mxu0 %vm353_vm4, %v4088_v29  ;;  %v2233_v63 = vpop.permute.xlu0 %2232  ;;  %v3297_v60 = vpop.permute.xlu1 %3296  ;;  %v3967_v29 = vld [vmem:[%s5084_s4 + $0x54] sm:$0xf] }
 0x2e0   : > { %v2238_v5 = vsel %vm5095_vm7, %v2233_v63, %v2235_v62 }
 0x2e1   : > { %3894 = vmatmul.mubr.msk.bf16.vlgmr.msra.gmra.mrb[40].mxu0 %vm346_vm3, %v3889_v55  ;;  %v2244_v0 = vsel %vm353_vm4, %v2238_v5, 0 }
 0x2e2   : > { %2310 = vmatpush1.bf16.msra.mxu0 %v2304_v12  ;;  %2341 = vmatprep.mubr.bf16.mxu0 %v4101_v39 }
 0x2e3   : > { %v2237_v17 = vpop.permute.xlu0 %2236  ;;  %3923 = vmatprep.subr.msk.bf16.mxu0 %vm353_vm4, %v2501_v18  ;;  %v3398_v43 = vpop.permute.xlu1 %3397 }
 0x2e4   : > { %v2239_v2 = vsel %vm5096_vm5, %v2235_v62, %v2237_v17 }
 0x2e5   : > { %3902 = vmatprep.subr.msk.bf16.mxu1 %vm353_vm4, %v2239_v2  ;;  %v3983_v2 = vld [vmem:[%s5084_s4 + $0x5c] sm:$0xf] }
 0x2e6   : > { %2250 = vmatpush1.bf16.msra.mxu1 %v2244_v0 }
 0x2e7   : > { %v4943_v51 = vpop.permute.xlu0 %3498  ;;  %v3497_v12 = vpop.permute.xlu1 %3496 }
 0x2e9   : > { %3903 = vmatmul.mubr.msk.bf16.vlgmr.msra.gmra.mrb[40].mxu1 %vm346_vm3, %v3898_v46  ;;  %3908 = vmatmul.mubr.msk.bf16.vlgmr.msra.gmra.mrb[44].mxu0 %vm346_vm3, %v3904_v49 }
 0x2ea   : > { %2446 = vmatprep.mubr.bf16.mxu1 %v4101_v39  ;;  %2543 = vmatprep.mubr.bf16.mxu0 %v4101_v39 }
 0x2eb   : > { %v2400_v50 = vpop.permute.xlu0 %2399 }
 0x2ec   : > { %v2403_v4 = vsel %vm571_vm2, %v2398_v47, %v2400_v50  ;;  %v2404_v13 = vsel %vm571_vm2, %v2400_v50, %v4718_v37  ;;  %v2701_v37 = vsel %vm286_vm1, %v2697_v44, %v4746_v56  ;;  %v3928_v56 = vld [vmem:[%s5084_s4 + $0x40] sm:$0xf] }
 0x2ed   : > { %v2409_v57 = vsel %vm353_vm4, %v2403_v4, 0  ;;  %3916 = vmatprep.subr.msk.bf16.mxu1 %vm353_vm4, %v2404_v13 }
 0x2ee   : > { %2415 = vmatpush1.bf16.msra.mxu1 %v2409_v57 }
 0x2ef   : > { %v2495_v33 = vpop.permute.xlu0 %2494 }
 0x2f0   : > { %v2500_v59 = vsel %vm2112_vm14, %v2495_v33, %v2497_v53 }
 0x2f1   : > { %v2506_v15 = vsel %vm353_vm4, %v2500_v59, 0  ;;  %3917 = vmatmul.mubr.msk.bf16.vlgmr.msra.gmra.mrb[44].mxu1 %vm346_vm3, %v3912_v20 }
 0x2f2   : > { %2512 = vmatpush1.bf16.msra.mxu0 %v2506_v15  ;;  %2646 = vmatprep.mubr.bf16.mxu1 %v4101_v39  ;;  %v4008_v15 = vld [vmem:[%s5084_s4 + $0x68] sm:$0xf] }
 0x2f3   : > { %3939 = vmatprep.subr.msk.bf16.mxu0 %vm353_vm4, %v2701_v37  ;;  %v2600_v16 = vpop.permute.xlu0 %2599 }
 0x2f4   : > { %v2603_v36 = vsel %vm324_vm0, %v2598_v31, %v2600_v16  ;;  %v2604_v40 = vsel %vm324_vm0, %v2600_v16, %v4728_v22  ;;  %v2901_v22 = vsel %vm1062_vm15, %v2897_v19, %v4758_v3  ;;  %v3944_v3 = vld [vmem:[%s5084_s4 + $0x48] sm:$0xf]  ;;  %vm5097_vm0 = vcmask 449536  }
 0x2f5   : > { %v2609_v62 = vsel %vm353_vm4, %v2603_v36, 0  ;;  %3924 = vmatmul.mubr.msk.bf16.vlgmr.msra.gmra.mrb[48].mxu0 %vm346_vm3, %v3919_v34  ;;  %3932 = vmatprep.subr.msk.bf16.mxu1 %vm353_vm4, %v2604_v40 }
 0x2f6   : > { %2615 = vmatpush1.bf16.msra.mxu1 %v2609_v62  ;;  %2743 = vmatprep.mubr.bf16.mxu0 %v4101_v39 }
 0x2f7   : > { %v2695_v27 = vpop.permute.xlu0 %2694 }
 0x2f8   : > { %v2700_v42 = vsel %vm286_vm1, %v2695_v27, %v2697_v44  ;;  %vm5098_vm1 = vmmov %vm5097_vm0 }
 0x2f9   : > { %v2706_v30 = vsel %vm353_vm4, %v2700_v42, 0  ;;  %3933 = vmatmul.mubr.msk.bf16.vlgmr.msra.gmra.mrb[48].mxu1 %vm346_vm3, %v3928_v56 }
 0x2fa   : > { %2712 = vmatpush1.bf16.msra.mxu0 %v2706_v30  ;;  %2846 = vmatprep.mubr.bf16.mxu1 %v4101_v39 }
 0x2fb   : > { %3955 = vmatprep.subr.msk.bf16.mxu0 %vm353_vm4, %v2901_v22  ;;  %v2800_v47 = vpop.permute.xlu0 %2799 }
 0x2fc   : > { %v2803_v35 = vsel %vm1129_vm6, %v2798_v58, %v2800_v47  ;;  %v2804_v48 = vsel %vm1129_vm6, %v2800_v47, %v4741_v41  ;;  %v3101_v41 = vsel %vm1331_vm12, %v3097_v23, %v4768_v24  ;;  %v3960_v24 = vld [vmem:[%s5084_s4 + $0x50] sm:$0xf] }
 0x2fd   : > { %v2809_v52 = vsel %vm353_vm4, %v2803_v35, 0  ;;  %3940 = vmatmul.mubr.msk.bf16.vlgmr.msra.gmra.mrb[52].mxu0 %vm346_vm3, %v3935_v45  ;;  %3948 = vmatprep.subr.msk.bf16.mxu1 %vm353_vm4, %v2804_v48 }
 0x2fe   : > { %2815 = vmatpush1.bf16.msra.mxu1 %v2809_v52  ;;  %2943 = vmatprep.mubr.bf16.mxu0 %v4101_v39 }
 0x2ff   : > { %v2895_v28 = vpop.permute.xlu0 %2894 }
 0x300   : > { %v2900_v53 = vsel %vm1062_vm15, %v2895_v28, %v2897_v19  ;;  %v3598_v19 = vpop.permute.xlu1 %3597 }
 0x301   : > { %v2906_v54 = vsel %vm353_vm4, %v2900_v53, 0  ;;  %3949 = vmatmul.mubr.msk.bf16.vlgmr.msra.gmra.mrb[52].mxu1 %vm346_vm3, %v3944_v3 }
 0x302   : > { %2912 = vmatpush1.bf16.msra.mxu0 %v2906_v54  ;;  %3046 = vmatprep.mubr.bf16.mxu1 %v4101_v39 }
 0x303   : > { %3971 = vmatprep.subr.msk.bf16.mxu0 %vm353_vm4, %v3101_v41  ;;  %v3000_v38 = vpop.permute.xlu0 %2999 }
 0x304   : > { %v3003_v31 = vsel %vm1232_vm13, %v2998_v7, %v3000_v38  ;;  %v3004_v26 = vsel %vm1232_vm13, %v3000_v38, %v4755_v61  ;;  %v3301_v61 = vsel %vm1309_vm10, %v3297_v60, %v4777_v32  ;;  %v3976_v32 = vld [vmem:[%s5084_s4 + $0x58] sm:$0xf]  ;;  %v3602_v57 = vpop.permute.xlu1 %3601 }
 0x305   : > { %v3009_v1 = vsel %vm353_vm4, %v3003_v31, 0  ;;  %3956 = vmatmul.mubr.msk.bf16.vlgmr.msra.gmra.mrb[56].mxu0 %vm346_vm3, %v3951_v10  ;;  %3964 = vmatprep.subr.msk.bf16.mxu1 %vm353_vm4, %v3004_v26 }
 0x306   : > { %3015 = vmatpush1.bf16.msra.mxu1 %v3009_v1  ;;  %3143 = vmatprep.mubr.bf16.mxu0 %v4101_v39 }
 0x307   : > { %v3095_v8 = vpop.permute.xlu0 %3094 }
 0x308   : > { %v3100_v6 = vsel %vm1331_vm12, %v3095_v8, %v3097_v23 }
 0x309   : > { %v3106_v11 = vsel %vm353_vm4, %v3100_v6, 0  ;;  %3965 = vmatmul.mubr.msk.bf16.vlgmr.msra.gmra.mrb[56].mxu1 %vm346_vm3, %v3960_v24 }
 0x30a   : > { %3112 = vmatpush1.bf16.msra.mxu0 %v3106_v11  ;;  %3246 = vmatprep.mubr.bf16.mxu1 %v4101_v39 }
 0x30b   : > { %3987 = vmatprep.subr.msk.bf16.mxu0 %vm353_vm4, %v3301_v61  ;;  %v3200_v25 = vpop.permute.xlu0 %3199 }
 0x30c   : > { %v3203_v55 = vsel %vm1414_vm11, %v3198_v14, %v3200_v25  ;;  %v3204_v44 = vsel %vm1414_vm11, %v3200_v25, %v4766_v9  ;;  %v3501_v9 = vsel %vm1040_vm8, %v3497_v12, %v4943_v51  ;;  %v3992_v51 = vld [vmem:[%s5084_s4 + $0x60] sm:$0xf] }
 0x30d   : > { %v3209_v63 = vsel %vm353_vm4, %v3203_v55, 0  ;;  %3972 = vmatmul.mubr.msk.bf16.vlgmr.msra.gmra.mrb[60].mxu0 %vm346_vm3, %v3967_v29  ;;  %3980 = vmatprep.subr.msk.bf16.mxu1 %vm353_vm4, %v3204_v44 }
 0x30e   : > { %3215 = vmatpush1.bf16.msra.mxu1 %v3209_v63  ;;  %3343 = vmatprep.mubr.bf16.mxu0 %v4101_v39 }
 0x30f   : > { %v3295_v18 = vpop.permute.xlu0 %3294 }
 0x310   : > { %v3300_v5 = vsel %vm1309_vm10, %v3295_v18, %v3297_v60 }
 0x311   : > { %v3306_v17 = vsel %vm353_vm4, %v3300_v5, 0  ;;  %3981 = vmatmul.mubr.msk.bf16.vlgmr.msra.gmra.mrb[60].mxu1 %vm346_vm3, %v3976_v32 }
 0x312   : > { %3312 = vmatpush1.bf16.msra.mxu0 %v3306_v17  ;;  %3446 = vmatprep.mubr.bf16.mxu1 %v4101_v39 }
 0x313   : > { %4003 = vmatprep.subr.msk.bf16.mxu0 %vm353_vm4, %v3501_v9  ;;  %v3400_v58 = vpop.permute.xlu0 %3399 }
 0x314   : > { %v3403_v0 = vsel %vm1210_vm9, %v3398_v43, %v3400_v58  ;;  %v3404_v46 = vsel %vm1210_vm9, %v3400_v58, %v4775_v21  ;;  %v3999_v21 = vld [vmem:[%s5084_s4 + $0x64] sm:$0xf] }
 0x315   : > { %v3409_v49 = vsel %vm353_vm4, %v3403_v0, 0  ;;  %3988 = vmatmul.mubr.msk.bf16.vlgmr.msra.gmra.mrb[64].mxu0 %vm346_vm3, %v3983_v2  ;;  %3996 = vmatprep.subr.msk.bf16.mxu1 %vm353_vm4, %v3404_v46 }
 0x316   : > { %3415 = vmatpush1.bf16.msra.mxu1 %v3409_v49  ;;  %3543 = vmatprep.mubr.bf16.mxu0 %v4101_v39 }
 0x317   : > { %v3495_v50 = vpop.permute.xlu0 %3494 }
 0x318   : > { %v3500_v4 = vsel %vm1040_vm8, %v3495_v50, %v3497_v12 }
 0x319   : > { %v3506_v13 = vsel %vm353_vm4, %v3500_v4, 0  ;;  %3997 = vmatmul.mubr.msk.bf16.vlgmr.msra.gmra.mrb[64].mxu1 %vm346_vm3, %v3992_v51 }
 0x31a   : > { %3512 = vmatpush1.bf16.msra.mxu0 %v3506_v13  ;;  %3646 = vmatprep.mubr.bf16.mxu1 %v4101_v39 }
 0x31b   : > { %v3600_v20 = vpop.permute.xlu0 %3599 }
 0x31c   : > { %v3603_v33 = vsel %vm5097_vm0, %v3598_v19, %v3600_v20  ;;  %v3604_v59 = vsel %vm5098_vm1, %v3600_v20, %v3602_v57 }
 0x31d   : > { %v3609_v7 = vsel %vm353_vm4, %v3603_v33, 0  ;;  %4004 = vmatmul.mubr.msk.bf16.vlgmr.msra.gmra.mrb[68].mxu0 %vm346_vm3, %v3999_v21  ;;  %4012 = vmatprep.subr.msk.bf16.mxu1 %vm353_vm4, %v3604_v59 }
 0x31e   : > { %3615 = vmatpush1.bf16.msra.mxu1 %v3609_v7 }
 0x321   : > { %4013 = vmatmul.mubr.msk.bf16.vlgmr.msra.gmra.mrb[68].mxu1 %vm346_vm3, %v4008_v15 }
 0x360   : > { %v1108_v39 = vpop.f32.mrb[16].mxu1 }
 0x361   : > { %v1110_v37 = vpop.f32.mrb[17].mxu1 }
 0x362   : > { %v1112_v34 = vpop.f32.mrb[18].mxu1 }
 0x363   : > { %v1113_v16 = vpop.f32.mrb[19].mxu1 }
 0x368   : > { %v1175_v36 = vpop.f32.mrb[20].mxu0 }
 0x369   : > { %v1176_v40 = vadd.f32 %v1175_v36, %v1108_v39  ;;  %v1177_v62 = vpop.f32.mrb[21].mxu0 }
 0x36a   : > { %v1178_v56 = vadd.f32 %v1177_v62, %v1110_v37  ;;  %v1179_v23 = vpop.f32.mrb[22].mxu0 }
 0x36b   : > { %v1180_v27 = vpop.f32.mrb[23].mxu0 }
 0x370   : > { %v1278_v42 = vpop.f32.mrb[20].mxu1 }
 0x371   : > { %v1285_v30 = vadd.f32 %v1278_v42, %v1176_v40  ;;  %v1280_v22 = vpop.f32.mrb[21].mxu1 }
 0x372   : > { %v1286_v45 = vadd.f32 %v1280_v22, %v1178_v56  ;;  %v1282_v47 = vpop.f32.mrb[22].mxu1 }
 0x373   : > { %v1283_v35 = vpop.f32.mrb[23].mxu1 }
 0x378   : > { %v1377_v48 = vpop.f32.mrb[24].mxu0 }
 0x379   : > { %v1384_v14 = vadd.f32 %v1377_v48, %v1285_v30  ;;  %v1379_v52 = vpop.f32.mrb[25].mxu0 }
 0x37a   : > { %v1385_v3 = vadd.f32 %v1379_v52, %v1286_v45  ;;  %v1381_v28 = vpop.f32.mrb[26].mxu0 }
 0x37b   : > { %v1382_v53 = vpop.f32.mrb[27].mxu0 }
 0x380   : > { %v1481_v54 = vpop.f32.mrb[24].mxu1 }
 0x381   : > { %v1488_v41 = vadd.f32 %v1481_v54, %v1384_v14  ;;  %v1483_v10 = vpop.f32.mrb[25].mxu1 }
 0x382   : > { %v1489_v60 = vadd.f32 %v1483_v10, %v1385_v3  ;;  %v1485_v38 = vpop.f32.mrb[26].mxu1 }
 0x383   : > { %v1486_v31 = vpop.f32.mrb[27].mxu1 }
 0x388   : > { %v1578_v26 = vpop.f32.mrb[28].mxu0 }
 0x389   : > { %v1585_v1 = vadd.f32 %v1578_v26, %v1488_v41  ;;  %v1580_v24 = vpop.f32.mrb[29].mxu0 }
 0x38a   : > { %v1586_v8 = vadd.f32 %v1580_v24, %v1489_v60  ;;  %v1582_v6 = vpop.f32.mrb[30].mxu0 }
 0x38b   : > { %v1583_v43 = vpop.f32.mrb[31].mxu0 }
 0x390   : > { %v1681_v11 = vpop.f32.mrb[28].mxu1 }
 0x391   : > { %v1688_v61 = vadd.f32 %v1681_v11, %v1585_v1  ;;  %v1683_v29 = vpop.f32.mrb[29].mxu1 }
 0x392   : > { %v1689_v25 = vadd.f32 %v1683_v29, %v1586_v8  ;;  %v1685_v55 = vpop.f32.mrb[30].mxu1 }
 0x393   : > { %v1686_v44 = vpop.f32.mrb[31].mxu1 }
 0x398   : > { %v1778_v63 = vpop.f32.mrb[32].mxu0 }
 0x399   : > { %v1785_v32 = vadd.f32 %v1778_v63, %v1688_v61  ;;  %v1780_v12 = vpop.f32.mrb[33].mxu0 }
 0x39a   : > { %v1786_v18 = vadd.f32 %v1780_v12, %v1689_v25  ;;  %v1782_v5 = vpop.f32.mrb[34].mxu0 }
 0x39b   : > { %v1783_v17 = vpop.f32.mrb[35].mxu0 }
 0x3a0   : > { %v1881_v9 = vpop.f32.mrb[32].mxu1 }
 0x3a1   : > { %v1888_v2 = vadd.f32 %v1881_v9, %v1785_v32  ;;  %v1883_v58 = vpop.f32.mrb[33].mxu1 }
 0x3a2   : > { %v1889_v0 = vadd.f32 %v1883_v58, %v1786_v18  ;;  %v1885_v46 = vpop.f32.mrb[34].mxu1 }
 0x3a3   : > { %v1886_v49 = vpop.f32.mrb[35].mxu1 }
 0x3a8   : > { %v1978_v51 = vpop.f32.mrb[36].mxu0 }
 0x3a9   : > { %v1985_v19 = vadd.f32 %v1978_v51, %v1888_v2  ;;  %v1980_v50 = vpop.f32.mrb[37].mxu0 }
 0x3aa   : > { %v1986_v4 = vadd.f32 %v1980_v50, %v1889_v0  ;;  %v1982_v13 = vpop.f32.mrb[38].mxu0 }
 0x3ab   : > { %v1983_v21 = vpop.f32.mrb[39].mxu0 }
 0x3b0   : > { %v2081_v57 = vpop.f32.mrb[36].mxu1 }
 0x3b1   : > { %v2088_v20 = vadd.f32 %v2081_v57, %v1985_v19  ;;  %v2083_v33 = vpop.f32.mrb[37].mxu1 }
 0x3b2   : > { %v2089_v59 = vadd.f32 %v2083_v33, %v1986_v4  ;;  %v2085_v7 = vpop.f32.mrb[38].mxu1 }
 0x3b3   : > { %v2086_v15 = vpop.f32.mrb[39].mxu1 }
 0x3b4   : > { %v2180_v39 = vpop.f32.mrb[40].mxu0 }
 0x3b5   : > { %v2187_v37 = vadd.f32 %v2180_v39, %v2088_v20  ;;  %v2182_v34 = vpop.f32.mrb[41].mxu0 }
 0x3b6   : > { %v2188_v16 = vadd.f32 %v2182_v34, %v2089_v59  ;;  %v2184_v36 = vpop.f32.mrb[42].mxu0 }
 0x3b7   : > { %v2185_v40 = vpop.f32.mrb[43].mxu0 }
 0x3bc   : > { %v2283_v62 = vpop.f32.mrb[40].mxu1  ;;  %v2343_v56 = vpop.f32.mrb[44].mxu0 }
 0x3bd   : > { %v2290_v23 = vadd.f32 %v2283_v62, %v2187_v37  ;;  %v2285_v27 = vpop.f32.mrb[41].mxu1  ;;  %v2345_v42 = vpop.f32.mrb[45].mxu0 }
 0x3be   : > { %v2291_v30 = vadd.f32 %v2285_v27, %v2188_v16  ;;  %v2287_v22 = vpop.f32.mrb[42].mxu1  ;;  %v2347_v45 = vpop.f32.mrb[46].mxu0 }
 0x3bf   : > { %v2350_v47 = vadd.f32 %v2343_v56, %v2290_v23  ;;  %v2288_v35 = vpop.f32.mrb[43].mxu1  ;;  %v2348_v48 = vpop.f32.mrb[47].mxu0 }
 0x3c0   : > { %v2351_v14 = vadd.f32 %v2345_v42, %v2291_v30 }
 0x3c4   : > { %v2448_v52 = vpop.f32.mrb[44].mxu1 }
 0x3c5   : > { %v2455_v3 = vadd.f32 %v2448_v52, %v2350_v47  ;;  %v2450_v28 = vpop.f32.mrb[45].mxu1 }
 0x3c6   : > { %v2456_v53 = vadd.f32 %v2450_v28, %v2351_v14  ;;  %v2452_v54 = vpop.f32.mrb[46].mxu1 }
 0x3c7   : > { %v2453_v41 = vpop.f32.mrb[47].mxu1 }
 0x3c8   : > { %v2545_v10 = vpop.f32.mrb[48].mxu0 }
 0x3c9   : > { %v2552_v60 = vadd.f32 %v2545_v10, %v2455_v3  ;;  %v2547_v38 = vpop.f32.mrb[49].mxu0 }
 0x3ca   : > { %v2553_v31 = vadd.f32 %v2547_v38, %v2456_v53  ;;  %v2549_v26 = vpop.f32.mrb[50].mxu0 }
 0x3cb   : > { %v2550_v1 = vpop.f32.mrb[51].mxu0 }
 0x3cc   : > { %v2648_v24 = vpop.f32.mrb[48].mxu1  ;;  %v3661_v1 = vpop.permute.xlu0 %3660 }
 0x3cd   : > { %v2655_v8 = vadd.f32 %v2648_v24, %v2552_v60  ;;  %v2650_v6 = vpop.f32.mrb[49].mxu1 }
 0x3ce   : > { %v2656_v43 = vadd.f32 %v2650_v6, %v2553_v31  ;;  %v2652_v11 = vpop.f32.mrb[50].mxu1 }
 0x3cf   : > { %v2653_v61 = vpop.f32.mrb[51].mxu1 }
 0x3d0   : > { %v2745_v29 = vpop.f32.mrb[52].mxu0 }
 0x3d1   : > { %v2752_v25 = vadd.f32 %v2745_v29, %v2655_v8  ;;  %v2747_v55 = vpop.f32.mrb[53].mxu0 }
 0x3d2   : > { %v2753_v44 = vadd.f32 %v2747_v55, %v2656_v43  ;;  %v2749_v63 = vpop.f32.mrb[54].mxu0 }
 0x3d3   : > { %v2750_v32 = vpop.f32.mrb[55].mxu0 }
 0x3d4   : > { %v2848_v12 = vpop.f32.mrb[52].mxu1 }
 0x3d5   : > { %v2855_v18 = vadd.f32 %v2848_v12, %v2752_v25  ;;  %v2850_v5 = vpop.f32.mrb[53].mxu1 }
 0x3d6   : > { %v2856_v17 = vadd.f32 %v2850_v5, %v2753_v44  ;;  %v2852_v9 = vpop.f32.mrb[54].mxu1 }
 0x3d7   : > { %v2853_v2 = vpop.f32.mrb[55].mxu1 }
 0x3d8   : > { %v2945_v58 = vpop.f32.mrb[56].mxu0 }
 0x3d9   : > { %v2952_v0 = vadd.f32 %v2945_v58, %v2855_v18  ;;  %v2947_v46 = vpop.f32.mrb[57].mxu0 }
 0x3da   : > { %v2953_v49 = vadd.f32 %v2947_v46, %v2856_v17  ;;  %v2949_v51 = vpop.f32.mrb[58].mxu0 }
 0x3db   : > { %v2950_v19 = vpop.f32.mrb[59].mxu0 }
 0x3dc   : > { %v3048_v50 = vpop.f32.mrb[56].mxu1 }
 0x3dd   : > { %v3055_v4 = vadd.f32 %v3048_v50, %v2952_v0  ;;  %v3050_v13 = vpop.f32.mrb[57].mxu1 }
 0x3de   : > { %v3056_v21 = vadd.f32 %v3050_v13, %v2953_v49  ;;  %v3052_v57 = vpop.f32.mrb[58].mxu1 }
 0x3df   : > { %v3053_v20 = vpop.f32.mrb[59].mxu1 }
 0x3e0   : > { %v3145_v33 = vpop.f32.mrb[60].mxu0 }
 0x3e1   : > { %v3152_v59 = vadd.f32 %v3145_v33, %v3055_v4  ;;  %v3147_v7 = vpop.f32.mrb[61].mxu0 }
 0x3e2   : > { %v3153_v15 = vadd.f32 %v3147_v7, %v3056_v21  ;;  %v3149_v39 = vpop.f32.mrb[62].mxu0 }
 0x3e3   : > { %v3150_v37 = vpop.f32.mrb[63].mxu0 }
 0x3e4   : > { %v3248_v34 = vpop.f32.mrb[60].mxu1 }
 0x3e5   : > { %v3255_v16 = vadd.f32 %v3248_v34, %v3152_v59  ;;  %v3250_v36 = vpop.f32.mrb[61].mxu1 }
 0x3e6   : > { %v3256_v40 = vadd.f32 %v3250_v36, %v3153_v15  ;;  %v3252_v62 = vpop.f32.mrb[62].mxu1 }
 0x3e7   : > { %v3253_v56 = vpop.f32.mrb[63].mxu1 }
 0x3e8   : > { %v3345_v23 = vpop.f32.mrb[64].mxu0 }
 0x3e9   : > { %v3352_v27 = vadd.f32 %v3345_v23, %v3255_v16  ;;  %v3347_v42 = vpop.f32.mrb[65].mxu0 }
 0x3ea   : > { %v3353_v30 = vadd.f32 %v3347_v42, %v3256_v40  ;;  %v3349_v22 = vpop.f32.mrb[66].mxu0 }
 0x3eb   : > { %v3350_v45 = vpop.f32.mrb[67].mxu0 }
 0x3ec   : > { %v3448_v47 = vpop.f32.mrb[64].mxu1 }
 0x3ed   : > { %v3455_v35 = vadd.f32 %v3448_v47, %v3352_v27  ;;  %v3450_v48 = vpop.f32.mrb[65].mxu1 }
 0x3ee   : > { %v3456_v14 = vadd.f32 %v3450_v48, %v3353_v30  ;;  %v3452_v52 = vpop.f32.mrb[66].mxu1 }
 0x3ef   : > { %v3453_v3 = vpop.f32.mrb[67].mxu1 }
 0x3f0   : > { %v3545_v28 = vpop.f32.mrb[68].mxu0 }
 0x3f1   : > { %v3552_v53 = vadd.f32 %v3545_v28, %v3455_v35  ;;  %v3547_v54 = vpop.f32.mrb[69].mxu0 }
 0x3f2   : > { %v3553_v41 = vadd.f32 %v3547_v54, %v3456_v14  ;;  %v3549_v10 = vpop.f32.mrb[70].mxu0 }
 0x3f3   : > { %v3550_v60 = vpop.f32.mrb[71].mxu0 }
 0x3f4   : > { %v3648_v38 = vpop.f32.mrb[68].mxu1 }
 0x3f5   : > { %v3655_v31 = vadd.f32 %v3648_v38, %v3552_v53  ;;  %v3650_v26 = vpop.f32.mrb[69].mxu1 }
 0x3f6   : > { %v3656_v24 = vadd.f32 %v3650_v26, %v3553_v41  ;;  %v3652_v8 = vpop.f32.mrb[70].mxu1 }
 0x3f7   : > { %v3663_v6 = vadd.f32 %v3661_v1, %v3655_v31  ;;  %v3653_v43 = vpop.f32.mrb[71].mxu1 }
 0x3f8   : > { %v3664_v11 = vadd.f32 %v3661_v1, %v3656_v24 }
 0x3f9   : > { %v3665_v61 = vmax.f32 %v3663_v6, 0.0 }
 0x3fa   : > { %v3666_v29 = vmax.f32 %v3664_v11, 0.0 }
 0x3fb   : > { %3667 = vst [vmem:[%s251_s27] sm:$0xff] %v3665_v61 }
 0x3fc   : > { %3668 = vst [vmem:[%s251_s27 + $0x8] sm:$0xff] %v3666_v29 }
 0x3fd PF: > { %s16_s21 = sadd.s32 1, %s4096_s21  }
 0x3fe   : > { %p13_p4 = scmp.ge.s32.totalorder %s16_s21, 4  }
 0x400   :  { %15 = sbr.rel (!%p13_p4) target bundleno = 1 (0x1), region = 111 }

</bundles_post_ra>
